<compile_context>
chip_gen: v5e
topology: v5e:2x2
jax: 0.10.0
libtpu: 0.0.40
codegen_flags: <defaults>
</compile_context>

<pallas_src>
import jax
import jax.numpy as jnp
from jax.experimental import pallas as pl
from jax.experimental.pallas import tpu as pltpu


# ------------------------------ fused kernel ---------------------------------
def _make_alice_kernel(n_layers, batch, seq_len, hidden):
    B, T, H = batch, seq_len, hidden

    def kernel(*refs):
        # -- unpack refs: inputs, then outputs --
        x_ref = refs[0]                                      # (T*B, D) time-major
        layer_refs = [(refs[1 + 3 * l], refs[2 + 3 * l], refs[3 + 3 * l])
                      for l in range(n_layers)]
        base = 1 + 3 * n_layers
        h0_ref, c0_ref, lw_ref, lb_ref = refs[base:base + 4]
        y_ref, hn_ref, cn_ref = refs[base + 4:base + 7]

        # Read all initial states up-front (safe under h0<->hn / c0<->cn aliasing).
        h_prev = [h0_ref[l].astype(jnp.float32) for l in range(n_layers)]
        c_prev = [c0_ref[l].astype(jnp.float32) for l in range(n_layers)]

        seq = x_ref[...].astype(jnp.float32)                 # (T*B, D), rows t*B+b
        for l in range(n_layers):
            wih_ref, whh_ref, b_ref = layer_refs[l]
            wih = wih_ref[...].astype(jnp.float32)           # (D_l, 4H) fused gates
            whh = whh_ref[...].astype(jnp.float32)           # (H,   4H) fused gates
            bias = b_ref[...].astype(jnp.float32)            # (1,   4H) b_ih + b_hh

            # Hoisted full-sequence input projection: ONE lane-dense matmul.
            gx = jnp.dot(seq, wih, preferred_element_type=jnp.float32) + bias

            # Serial recurrence: one fused (B,H)x(H,4H) matmul per timestep.
            h = h_prev[l]
            c = c_prev[l]
            hs = []
            for t in range(T):
                pre = gx[t * B:(t + 1) * B, :] + jnp.dot(
                    h, whh, preferred_element_type=jnp.float32)   # (B, 4H)
                i_g = jax.nn.sigmoid(pre[:, 0 * H:1 * H])
                f_g = jax.nn.sigmoid(pre[:, 1 * H:2 * H])
                g_g = jnp.tanh(pre[:, 2 * H:3 * H])
                o_g = jax.nn.sigmoid(pre[:, 3 * H:4 * H])
                c = f_g * c + i_g * g_g
                h = o_g * jnp.tanh(c)
                hs.append(h)

            hn_ref[l] = h.astype(hn_ref.dtype)
            cn_ref[l] = c.astype(cn_ref.dtype)
            # Assemble the layer's output sequence once (no per-step masked stores).
            seq = jnp.concatenate(hs, axis=0)                # (T*B, H), rows t*B+b

        # Fused Linear head over the whole sequence; lane-dense (padded) output.
        y = (jnp.dot(seq, lw_ref[...].astype(jnp.float32),
                     preferred_element_type=jnp.float32)
             + lb_ref[...].astype(jnp.float32))
        y_ref[...] = y.astype(y_ref.dtype)                   # (T*B, d_pad)

    return kernel


# ------------------------------ public wrapper --------------------------------
def alice_forward_impl(x, states, params):
    """x: (B, T, input_size) batch-first; states: ((L,B,H), (L,B,H)).

    Returns (out, (h_n, c_n)) with out: (B*T, input_size), matching PyTorch.
    """
    h0, c0 = states
    B, T, d_in = x.shape
    L, _, H = h0.shape

    lin_w = params["lin_w_t"]                                # (H, d_out)
    lin_b = params["lin_b"]                                  # (1, d_out)
    d_out = lin_w.shape[-1]
    d_pad = ((d_out + 127) // 128) * 128                     # lane-dense head output
    if d_pad != d_out:
        lin_w = jnp.pad(lin_w, ((0, 0), (0, d_pad - d_out)))
        lin_b = jnp.pad(lin_b, ((0, 0), (0, d_pad - d_out)))

    # Time-major, flattened input: row t*B + b == x[b, t, :].
    x_tm = jnp.transpose(x, (1, 0, 2)).reshape(T * B, d_in)

    inputs = [x_tm]
    for lp in params["lstm"]:
        inputs += [lp["wih"], lp["whh"], lp["bias"]]
    inputs += [h0, c0, lin_w, lin_b]

    y_tm, h_n, c_n = pl.pallas_call(
        _make_alice_kernel(L, B, T, H),
        out_shape=(jax.ShapeDtypeStruct((T * B, d_pad), x.dtype),
                   jax.ShapeDtypeStruct((L, B, H), h0.dtype),
                   jax.ShapeDtypeStruct((L, B, H), c0.dtype)),
        # h0 -> h_n, c0 -> c_n reuse the same HBM buffers.
        input_output_aliases={1 + 3 * L: 1, 2 + 3 * L: 2},
    )(*inputs)

    # Kernel rows are time-major (t*B + b); PyTorch's reshape(-1, H) is
    # batch-major (b*T + t).  Reorder + unpad the tiny head output in XLA.
    y = jnp.transpose(y_tm.reshape(T, B, d_pad), (1, 0, 2)).reshape(B * T, d_pad)
    y = y[:, :d_out]
    return y, (h_n, c_n)


alice_forward = jax.jit(alice_forward_impl)


# ------------------------------ parameters ------------------------------------
def init_params(key, input_size, hidden_size, n_layers, dtype=jnp.float32):
    """PyTorch-style U(-1/sqrt(H), 1/sqrt(H)) init, stored gate-fused + transposed."""
    H = hidden_size
    bound = 1.0 / float(hidden_size) ** 0.5
    params = {"lstm": []}
    for l in range(n_layers):
        d_in = input_size if l == 0 else hidden_size
        key, k1, k2, k3, k4 = jax.random.split(key, 5)
        w_ih = jax.random.uniform(k1, (4 * H, d_in), dtype, -bound, bound)
        w_hh = jax.random.uniform(k2, (4 * H, H), dtype, -bound, bound)
        b_ih = jax.random.uniform(k3, (4 * H,), dtype, -bound, bound)
        b_hh = jax.random.uniform(k4, (4 * H,), dtype, -bound, bound)
        params["lstm"].append({
            "wih": w_ih.T,                     # (d_in, 4H), gate order [i,f,g,o]
            "whh": w_hh.T,                     # (H, 4H)
            "bias": (b_ih + b_hh)[None, :],    # (1, 4H)
        })
    key, k5, k6 = jax.random.split(key, 3)
    w_lin = jax.random.uniform(k5, (input_size, hidden_size), dtype, -bound, bound)
    b_lin = jax.random.uniform(k6, (input_size,), dtype, -bound, bound)
    params["lin_w_t"] = w_lin.T                # (H, input_size)
    params["lin_b"] = b_lin[None, :]           # (1, input_size)
    return params


def init_states(n_layers, batch_size, hidden_size, dtype=jnp.float32):
    h = jnp.zeros((n_layers, batch_size, hidden_size), dtype)
    c = jnp.zeros((n_layers, batch_size, hidden_size), dtype)
    return (h, c)


# -------------------------- pure-JAX reference check ---------------------------
def _reference_forward(x, states, params):
    h0, c0 = states
    B, T, _ = x.shape
    H = h0.shape[-1]
    seq = x
    hs, cs = [], []
    for l, lp in enumerate(params["lstm"]):
        h, c = h0[l], c0[l]
        outs = []
        for t in range(T):
            xt = seq[:, t, :]
            pre = xt @ lp["wih"] + h @ lp["whh"] + lp["bias"]   # (B, 4H)
            i = jax.nn.sigmoid(pre[:, 0 * H:1 * H])
            f = jax.nn.sigmoid(pre[:, 1 * H:2 * H])
            g = jnp.tanh(pre[:, 2 * H:3 * H])
            o = jax.nn.sigmoid(pre[:, 3 * H:4 * H])
            c = f * c + i * g
            h = o * jnp.tanh(c)
            outs.append(h)
        seq = jnp.stack(outs, axis=1)                           # (B, T, H)
        hs.append(h)
        cs.append(c)
    flat = seq.reshape(B * T, H)
    y = flat @ params["lin_w_t"] + params["lin_b"]
    return y, (jnp.stack(hs), jnp.stack(cs))


if __name__ == "__main__":
    input_size, hidden_size, n_layers = 8, 32, 2
    batch, seq_len = 2, 8

    key = jax.random.PRNGKey(0)
    kp, kx = jax.random.split(key)
    params = init_params(kp, input_size, hidden_size, n_layers)
    x = jax.random.normal(kx, (batch, seq_len, input_size), jnp.float32)
    states = init_states(n_layers, batch, hidden_size)

    out, (h_n, c_n) = alice_forward(x, states, params)
    jax.block_until_ready((out, h_n, c_n))

    ref_out, (ref_h, ref_c) = _reference_forward(x, states, params)
    assert out.shape == (batch * seq_len, input_size)
    assert h_n.shape == (n_layers, batch, hidden_size)
    assert c_n.shape == (n_layers, batch, hidden_size)
    assert jnp.allclose(out, ref_out, atol=1e-4, rtol=1e-4)
    assert jnp.allclose(h_n, ref_h, atol=1e-4, rtol=1e-4)
    assert jnp.allclose(c_n, ref_c, atol=1e-4, rtol=1e-4)

    print("KERNEL_OK")
</pallas_src>

<mosaic_0001>
module attributes {stable_mosaic.version = 11 : i64} {
  func.func @kernel(%arg0: memref<16x8xf32, #tpu.memory_space<vmem>>, %arg1: memref<8x128xf32, #tpu.memory_space<vmem>>, %arg2: memref<32x128xf32, #tpu.memory_space<vmem>>, %arg3: memref<1x128xf32, #tpu.memory_space<vmem>>, %arg4: memref<32x128xf32, #tpu.memory_space<vmem>>, %arg5: memref<32x128xf32, #tpu.memory_space<vmem>>, %arg6: memref<1x128xf32, #tpu.memory_space<vmem>>, %arg7: memref<2x2x32xf32, #tpu.memory_space<vmem>>, %arg8: memref<2x2x32xf32, #tpu.memory_space<vmem>>, %arg9: memref<32x128xf32, #tpu.memory_space<vmem>>, %arg10: memref<1x128xf32, #tpu.memory_space<vmem>>, %arg11: memref<16x128xf32, #tpu.memory_space<vmem>>, %arg12: memref<2x2x32xf32, #tpu.memory_space<vmem>>, %arg13: memref<2x2x32xf32, #tpu.memory_space<vmem>>) attributes {dimension_semantics = [], scalar_prefetch = 0 : i64, scratch_operands = 0 : i64, tpu.core_type = #tpu.core_type<tc>} {
    %c0 = arith.constant 0 : index
    %c0_0 = arith.constant 0 : index
    %c0_1 = arith.constant 0 : index
    %0 = vector.load %arg7[%c0, %c0_0, %c0_1] : memref<2x2x32xf32, #tpu.memory_space<vmem>>, vector<1x2x32xf32>
    %1 = vector.shape_cast %0 : vector<1x2x32xf32> to vector<2x32xf32>
    %c1 = arith.constant 1 : index
    %c0_2 = arith.constant 0 : index
    %c0_3 = arith.constant 0 : index
    %2 = vector.load %arg7[%c1, %c0_2, %c0_3] : memref<2x2x32xf32, #tpu.memory_space<vmem>>, vector<1x2x32xf32>
    %3 = vector.shape_cast %2 : vector<1x2x32xf32> to vector<2x32xf32>
    %c0_4 = arith.constant 0 : index
    %c0_5 = arith.constant 0 : index
    %c0_6 = arith.constant 0 : index
    %4 = vector.load %arg8[%c0_4, %c0_5, %c0_6] : memref<2x2x32xf32, #tpu.memory_space<vmem>>, vector<1x2x32xf32>
    %5 = vector.shape_cast %4 : vector<1x2x32xf32> to vector<2x32xf32>
    %c1_7 = arith.constant 1 : index
    %c0_8 = arith.constant 0 : index
    %c0_9 = arith.constant 0 : index
    %6 = vector.load %arg8[%c1_7, %c0_8, %c0_9] : memref<2x2x32xf32, #tpu.memory_space<vmem>>, vector<1x2x32xf32>
    %7 = vector.shape_cast %6 : vector<1x2x32xf32> to vector<2x32xf32>
    %c0_10 = arith.constant 0 : index
    %c0_11 = arith.constant 0 : index
    %8 = vector.load %arg0[%c0_10, %c0_11] : memref<16x8xf32, #tpu.memory_space<vmem>>, vector<16x8xf32>
    %c0_12 = arith.constant 0 : index
    %c0_13 = arith.constant 0 : index
    %9 = vector.load %arg1[%c0_12, %c0_13] : memref<8x128xf32, #tpu.memory_space<vmem>>, vector<8x128xf32>
    %c0_14 = arith.constant 0 : index
    %c0_15 = arith.constant 0 : index
    %10 = vector.load %arg2[%c0_14, %c0_15] : memref<32x128xf32, #tpu.memory_space<vmem>>, vector<32x128xf32>
    %c0_16 = arith.constant 0 : index
    %c0_17 = arith.constant 0 : index
    %11 = vector.load %arg3[%c0_16, %c0_17] : memref<1x128xf32, #tpu.memory_space<vmem>>, vector<1x128xf32>
    %cst = arith.constant dense<0.000000e+00> : vector<16x128xf32>
    %12 = tpu.matmul %8, %9, %cst {dimension_numbers = #tpu.dot_dimension_numbers<[1], [0], [0], [1], [0, 0, 1, 1], [], []>} : vector<16x8xf32>, vector<8x128xf32>, vector<16x128xf32> -> vector<16x128xf32>
    %13 = vector.broadcast %11 : vector<1x128xf32> to vector<16x128xf32>
    %14 = arith.addf %12, %13 : vector<16x128xf32>
    %15 = vector.extract_strided_slice %14 {offsets = [0, 0], sizes = [2, 128], strides = [1, 1]} : vector<16x128xf32> to vector<2x128xf32>
    %cst_18 = arith.constant dense<0.000000e+00> : vector<2x128xf32>
    %16 = tpu.matmul %1, %10, %cst_18 {dimension_numbers = #tpu.dot_dimension_numbers<[1], [0], [0], [1], [0, 0, 1, 1], [], []>} : vector<2x32xf32>, vector<32x128xf32>, vector<2x128xf32> -> vector<2x128xf32>
    %17 = arith.addf %15, %16 : vector<2x128xf32>
    %18 = vector.extract_strided_slice %17 {offsets = [0, 0], sizes = [2, 32], strides = [1, 1]} : vector<2x128xf32> to vector<2x32xf32>
    %19 = arith.negf %18 : vector<2x32xf32>
    %20 = math.exp %19 : vector<2x32xf32>
    %cst_19 = arith.constant 1.000000e+00 : f32
    %21 = vector.broadcast %cst_19 : f32 to vector<2x32xf32>
    %22 = arith.addf %21, %20 : vector<2x32xf32>
    %23 = arith.divf %21, %22 : vector<2x32xf32>
    %24 = vector.extract_strided_slice %17 {offsets = [0, 32], sizes = [2, 32], strides = [1, 1]} : vector<2x128xf32> to vector<2x32xf32>
    %25 = arith.negf %24 : vector<2x32xf32>
    %26 = math.exp %25 : vector<2x32xf32>
    %cst_20 = arith.constant 1.000000e+00 : f32
    %27 = vector.broadcast %cst_20 : f32 to vector<2x32xf32>
    %28 = arith.addf %27, %26 : vector<2x32xf32>
    %29 = arith.divf %27, %28 : vector<2x32xf32>
    %30 = vector.extract_strided_slice %17 {offsets = [0, 64], sizes = [2, 32], strides = [1, 1]} : vector<2x128xf32> to vector<2x32xf32>
    %31 = math.tanh %30 : vector<2x32xf32>
    %32 = vector.extract_strided_slice %17 {offsets = [0, 96], sizes = [2, 32], strides = [1, 1]} : vector<2x128xf32> to vector<2x32xf32>
    %33 = arith.negf %32 : vector<2x32xf32>
    %34 = math.exp %33 : vector<2x32xf32>
    %cst_21 = arith.constant 1.000000e+00 : f32
    %35 = vector.broadcast %cst_21 : f32 to vector<2x32xf32>
    %36 = arith.addf %35, %34 : vector<2x32xf32>
    %37 = arith.divf %35, %36 : vector<2x32xf32>
    %38 = arith.mulf %29, %5 : vector<2x32xf32>
    %39 = arith.mulf %23, %31 : vector<2x32xf32>
    %40 = arith.addf %38, %39 : vector<2x32xf32>
    %41 = math.tanh %40 : vector<2x32xf32>
    %42 = arith.mulf %37, %41 : vector<2x32xf32>
    %43 = vector.extract_strided_slice %14 {offsets = [2, 0], sizes = [2, 128], strides = [1, 1]} : vector<16x128xf32> to vector<2x128xf32>
    %cst_22 = arith.constant dense<0.000000e+00> : vector<2x128xf32>
    %44 = tpu.matmul %42, %10, %cst_22 {dimension_numbers = #tpu.dot_dimension_numbers<[1], [0], [0], [1], [0, 0, 1, 1], [], []>} : vector<2x32xf32>, vector<32x128xf32>, vector<2x128xf32> -> vector<2x128xf32>
    %45 = arith.addf %43, %44 : vector<2x128xf32>
    %46 = vector.extract_strided_slice %45 {offsets = [0, 0], sizes = [2, 32], strides = [1, 1]} : vector<2x128xf32> to vector<2x32xf32>
    %47 = arith.negf %46 : vector<2x32xf32>
    %48 = math.exp %47 : vector<2x32xf32>
    %cst_23 = arith.constant 1.000000e+00 : f32
    %49 = vector.broadcast %cst_23 : f32 to vector<2x32xf32>
    %50 = arith.addf %49, %48 : vector<2x32xf32>
    %51 = arith.divf %49, %50 : vector<2x32xf32>
    %52 = vector.extract_strided_slice %45 {offsets = [0, 32], sizes = [2, 32], strides = [1, 1]} : vector<2x128xf32> to vector<2x32xf32>
    %53 = arith.negf %52 : vector<2x32xf32>
    %54 = math.exp %53 : vector<2x32xf32>
    %cst_24 = arith.constant 1.000000e+00 : f32
    %55 = vector.broadcast %cst_24 : f32 to vector<2x32xf32>
    %56 = arith.addf %55, %54 : vector<2x32xf32>
    %57 = arith.divf %55, %56 : vector<2x32xf32>
    %58 = vector.extract_strided_slice %45 {offsets = [0, 64], sizes = [2, 32], strides = [1, 1]} : vector<2x128xf32> to vector<2x32xf32>
    %59 = math.tanh %58 : vector<2x32xf32>
    %60 = vector.extract_strided_slice %45 {offsets = [0, 96], sizes = [2, 32], strides = [1, 1]} : vector<2x128xf32> to vector<2x32xf32>
    %61 = arith.negf %60 : vector<2x32xf32>
    %62 = math.exp %61 : vector<2x32xf32>
    %cst_25 = arith.constant 1.000000e+00 : f32
    %63 = vector.broadcast %cst_25 : f32 to vector<2x32xf32>
    %64 = arith.addf %63, %62 : vector<2x32xf32>
    %65 = arith.divf %63, %64 : vector<2x32xf32>
    %66 = arith.mulf %57, %40 : vector<2x32xf32>
    %67 = arith.mulf %51, %59 : vector<2x32xf32>
    %68 = arith.addf %66, %67 : vector<2x32xf32>
    %69 = math.tanh %68 : vector<2x32xf32>
    %70 = arith.mulf %65, %69 : vector<2x32xf32>
    %71 = vector.extract_strided_slice %14 {offsets = [4, 0], sizes = [2, 128], strides = [1, 1]} : vector<16x128xf32> to vector<2x128xf32>
    %cst_26 = arith.constant dense<0.000000e+00> : vector<2x128xf32>
    %72 = tpu.matmul %70, %10, %cst_26 {dimension_numbers = #tpu.dot_dimension_numbers<[1], [0], [0], [1], [0, 0, 1, 1], [], []>} : vector<2x32xf32>, vector<32x128xf32>, vector<2x128xf32> -> vector<2x128xf32>
    %73 = arith.addf %71, %72 : vector<2x128xf32>
    %74 = vector.extract_strided_slice %73 {offsets = [0, 0], sizes = [2, 32], strides = [1, 1]} : vector<2x128xf32> to vector<2x32xf32>
    %75 = arith.negf %74 : vector<2x32xf32>
    %76 = math.exp %75 : vector<2x32xf32>
    %cst_27 = arith.constant 1.000000e+00 : f32
    %77 = vector.broadcast %cst_27 : f32 to vector<2x32xf32>
    %78 = arith.addf %77, %76 : vector<2x32xf32>
    %79 = arith.divf %77, %78 : vector<2x32xf32>
    %80 = vector.extract_strided_slice %73 {offsets = [0, 32], sizes = [2, 32], strides = [1, 1]} : vector<2x128xf32> to vector<2x32xf32>
    %81 = arith.negf %80 : vector<2x32xf32>
    %82 = math.exp %81 : vector<2x32xf32>
    %cst_28 = arith.constant 1.000000e+00 : f32
    %83 = vector.broadcast %cst_28 : f32 to vector<2x32xf32>
    %84 = arith.addf %83, %82 : vector<2x32xf32>
    %85 = arith.divf %83, %84 : vector<2x32xf32>
    %86 = vector.extract_strided_slice %73 {offsets = [0, 64], sizes = [2, 32], strides = [1, 1]} : vector<2x128xf32> to vector<2x32xf32>
    %87 = math.tanh %86 : vector<2x32xf32>
    %88 = vector.extract_strided_slice %73 {offsets = [0, 96], sizes = [2, 32], strides = [1, 1]} : vector<2x128xf32> to vector<2x32xf32>
    %89 = arith.negf %88 : vector<2x32xf32>
    %90 = math.exp %89 : vector<2x32xf32>
    %cst_29 = arith.constant 1.000000e+00 : f32
    %91 = vector.broadcast %cst_29 : f32 to vector<2x32xf32>
    %92 = arith.addf %91, %90 : vector<2x32xf32>
    %93 = arith.divf %91, %92 : vector<2x32xf32>
    %94 = arith.mulf %85, %68 : vector<2x32xf32>
    %95 = arith.mulf %79, %87 : vector<2x32xf32>
    %96 = arith.addf %94, %95 : vector<2x32xf32>
    %97 = math.tanh %96 : vector<2x32xf32>
    %98 = arith.mulf %93, %97 : vector<2x32xf32>
    %99 = vector.extract_strided_slice %14 {offsets = [6, 0], sizes = [2, 128], strides = [1, 1]} : vector<16x128xf32> to vector<2x128xf32>
    %cst_30 = arith.constant dense<0.000000e+00> : vector<2x128xf32>
    %100 = tpu.matmul %98, %10, %cst_30 {dimension_numbers = #tpu.dot_dimension_numbers<[1], [0], [0], [1], [0, 0, 1, 1], [], []>} : vector<2x32xf32>, vector<32x128xf32>, vector<2x128xf32> -> vector<2x128xf32>
    %101 = arith.addf %99, %100 : vector<2x128xf32>
    %102 = vector.extract_strided_slice %101 {offsets = [0, 0], sizes = [2, 32], strides = [1, 1]} : vector<2x128xf32> to vector<2x32xf32>
    %103 = arith.negf %102 : vector<2x32xf32>
    %104 = math.exp %103 : vector<2x32xf32>
    %cst_31 = arith.constant 1.000000e+00 : f32
    %105 = vector.broadcast %cst_31 : f32 to vector<2x32xf32>
    %106 = arith.addf %105, %104 : vector<2x32xf32>
    %107 = arith.divf %105, %106 : vector<2x32xf32>
    %108 = vector.extract_strided_slice %101 {offsets = [0, 32], sizes = [2, 32], strides = [1, 1]} : vector<2x128xf32> to vector<2x32xf32>
    %109 = arith.negf %108 : vector<2x32xf32>
    %110 = math.exp %109 : vector<2x32xf32>
    %cst_32 = arith.constant 1.000000e+00 : f32
    %111 = vector.broadcast %cst_32 : f32 to vector<2x32xf32>
    %112 = arith.addf %111, %110 : vector<2x32xf32>
    %113 = arith.divf %111, %112 : vector<2x32xf32>
    %114 = vector.extract_strided_slice %101 {offsets = [0, 64], sizes = [2, 32], strides = [1, 1]} : vector<2x128xf32> to vector<2x32xf32>
    %115 = math.tanh %114 : vector<2x32xf32>
    %116 = vector.extract_strided_slice %101 {offsets = [0, 96], sizes = [2, 32], strides = [1, 1]} : vector<2x128xf32> to vector<2x32xf32>
    %117 = arith.negf %116 : vector<2x32xf32>
    %118 = math.exp %117 : vector<2x32xf32>
    %cst_33 = arith.constant 1.000000e+00 : f32
    %119 = vector.broadcast %cst_33 : f32 to vector<2x32xf32>
    %120 = arith.addf %119, %118 : vector<2x32xf32>
    %121 = arith.divf %119, %120 : vector<2x32xf32>
    %122 = arith.mulf %113, %96 : vector<2x32xf32>
    %123 = arith.mulf %107, %115 : vector<2x32xf32>
    %124 = arith.addf %122, %123 : vector<2x32xf32>
    %125 = math.tanh %124 : vector<2x32xf32>
    %126 = arith.mulf %121, %125 : vector<2x32xf32>
    %127 = vector.extract_strided_slice %14 {offsets = [8, 0], sizes = [2, 128], strides = [1, 1]} : vector<16x128xf32> to vector<2x128xf32>
    %cst_34 = arith.constant dense<0.000000e+00> : vector<2x128xf32>
    %128 = tpu.matmul %126, %10, %cst_34 {dimension_numbers = #tpu.dot_dimension_numbers<[1], [0], [0], [1], [0, 0, 1, 1], [], []>} : vector<2x32xf32>, vector<32x128xf32>, vector<2x128xf32> -> vector<2x128xf32>
    %129 = arith.addf %127, %128 : vector<2x128xf32>
    %130 = vector.extract_strided_slice %129 {offsets = [0, 0], sizes = [2, 32], strides = [1, 1]} : vector<2x128xf32> to vector<2x32xf32>
    %131 = arith.negf %130 : vector<2x32xf32>
    %132 = math.exp %131 : vector<2x32xf32>
    %cst_35 = arith.constant 1.000000e+00 : f32
    %133 = vector.broadcast %cst_35 : f32 to vector<2x32xf32>
    %134 = arith.addf %133, %132 : vector<2x32xf32>
    %135 = arith.divf %133, %134 : vector<2x32xf32>
    %136 = vector.extract_strided_slice %129 {offsets = [0, 32], sizes = [2, 32], strides = [1, 1]} : vector<2x128xf32> to vector<2x32xf32>
    %137 = arith.negf %136 : vector<2x32xf32>
    %138 = math.exp %137 : vector<2x32xf32>
    %cst_36 = arith.constant 1.000000e+00 : f32
    %139 = vector.broadcast %cst_36 : f32 to vector<2x32xf32>
    %140 = arith.addf %139, %138 : vector<2x32xf32>
    %141 = arith.divf %139, %140 : vector<2x32xf32>
    %142 = vector.extract_strided_slice %129 {offsets = [0, 64], sizes = [2, 32], strides = [1, 1]} : vector<2x128xf32> to vector<2x32xf32>
    %143 = math.tanh %142 : vector<2x32xf32>
    %144 = vector.extract_strided_slice %129 {offsets = [0, 96], sizes = [2, 32], strides = [1, 1]} : vector<2x128xf32> to vector<2x32xf32>
    %145 = arith.negf %144 : vector<2x32xf32>
    %146 = math.exp %145 : vector<2x32xf32>
    %cst_37 = arith.constant 1.000000e+00 : f32
    %147 = vector.broadcast %cst_37 : f32 to vector<2x32xf32>
    %148 = arith.addf %147, %146 : vector<2x32xf32>
    %149 = arith.divf %147, %148 : vector<2x32xf32>
    %150 = arith.mulf %141, %124 : vector<2x32xf32>
    %151 = arith.mulf %135, %143 : vector<2x32xf32>
    %152 = arith.addf %150, %151 : vector<2x32xf32>
    %153 = math.tanh %152 : vector<2x32xf32>
    %154 = arith.mulf %149, %153 : vector<2x32xf32>
    %155 = vector.extract_strided_slice %14 {offsets = [10, 0], sizes = [2, 128], strides = [1, 1]} : vector<16x128xf32> to vector<2x128xf32>
    %cst_38 = arith.constant dense<0.000000e+00> : vector<2x128xf32>
    %156 = tpu.matmul %154, %10, %cst_38 {dimension_numbers = #tpu.dot_dimension_numbers<[1], [0], [0], [1], [0, 0, 1, 1], [], []>} : vector<2x32xf32>, vector<32x128xf32>, vector<2x128xf32> -> vector<2x128xf32>
    %157 = arith.addf %155, %156 : vector<2x128xf32>
    %158 = vector.extract_strided_slice %157 {offsets = [0, 0], sizes = [2, 32], strides = [1, 1]} : vector<2x128xf32> to vector<2x32xf32>
    %159 = arith.negf %158 : vector<2x32xf32>
    %160 = math.exp %159 : vector<2x32xf32>
    %cst_39 = arith.constant 1.000000e+00 : f32
    %161 = vector.broadcast %cst_39 : f32 to vector<2x32xf32>
    %162 = arith.addf %161, %160 : vector<2x32xf32>
    %163 = arith.divf %161, %162 : vector<2x32xf32>
    %164 = vector.extract_strided_slice %157 {offsets = [0, 32], sizes = [2, 32], strides = [1, 1]} : vector<2x128xf32> to vector<2x32xf32>
    %165 = arith.negf %164 : vector<2x32xf32>
    %166 = math.exp %165 : vector<2x32xf32>
    %cst_40 = arith.constant 1.000000e+00 : f32
    %167 = vector.broadcast %cst_40 : f32 to vector<2x32xf32>
    %168 = arith.addf %167, %166 : vector<2x32xf32>
    %169 = arith.divf %167, %168 : vector<2x32xf32>
    %170 = vector.extract_strided_slice %157 {offsets = [0, 64], sizes = [2, 32], strides = [1, 1]} : vector<2x128xf32> to vector<2x32xf32>
    %171 = math.tanh %170 : vector<2x32xf32>
    %172 = vector.extract_strided_slice %157 {offsets = [0, 96], sizes = [2, 32], strides = [1, 1]} : vector<2x128xf32> to vector<2x32xf32>
    %173 = arith.negf %172 : vector<2x32xf32>
    %174 = math.exp %173 : vector<2x32xf32>
    %cst_41 = arith.constant 1.000000e+00 : f32
    %175 = vector.broadcast %cst_41 : f32 to vector<2x32xf32>
    %176 = arith.addf %175, %174 : vector<2x32xf32>
    %177 = arith.divf %175, %176 : vector<2x32xf32>
    %178 = arith.mulf %169, %152 : vector<2x32xf32>
    %179 = arith.mulf %163, %171 : vector<2x32xf32>
    %180 = arith.addf %178, %179 : vector<2x32xf32>
    %181 = math.tanh %180 : vector<2x32xf32>
    %182 = arith.mulf %177, %181 : vector<2x32xf32>
    %183 = vector.extract_strided_slice %14 {offsets = [12, 0], sizes = [2, 128], strides = [1, 1]} : vector<16x128xf32> to vector<2x128xf32>
    %cst_42 = arith.constant dense<0.000000e+00> : vector<2x128xf32>
    %184 = tpu.matmul %182, %10, %cst_42 {dimension_numbers = #tpu.dot_dimension_numbers<[1], [0], [0], [1], [0, 0, 1, 1], [], []>} : vector<2x32xf32>, vector<32x128xf32>, vector<2x128xf32> -> vector<2x128xf32>
    %185 = arith.addf %183, %184 : vector<2x128xf32>
    %186 = vector.extract_strided_slice %185 {offsets = [0, 0], sizes = [2, 32], strides = [1, 1]} : vector<2x128xf32> to vector<2x32xf32>
    %187 = arith.negf %186 : vector<2x32xf32>
    %188 = math.exp %187 : vector<2x32xf32>
    %cst_43 = arith.constant 1.000000e+00 : f32
    %189 = vector.broadcast %cst_43 : f32 to vector<2x32xf32>
    %190 = arith.addf %189, %188 : vector<2x32xf32>
    %191 = arith.divf %189, %190 : vector<2x32xf32>
    %192 = vector.extract_strided_slice %185 {offsets = [0, 32], sizes = [2, 32], strides = [1, 1]} : vector<2x128xf32> to vector<2x32xf32>
    %193 = arith.negf %192 : vector<2x32xf32>
    %194 = math.exp %193 : vector<2x32xf32>
    %cst_44 = arith.constant 1.000000e+00 : f32
    %195 = vector.broadcast %cst_44 : f32 to vector<2x32xf32>
    %196 = arith.addf %195, %194 : vector<2x32xf32>
    %197 = arith.divf %195, %196 : vector<2x32xf32>
    %198 = vector.extract_strided_slice %185 {offsets = [0, 64], sizes = [2, 32], strides = [1, 1]} : vector<2x128xf32> to vector<2x32xf32>
    %199 = math.tanh %198 : vector<2x32xf32>
    %200 = vector.extract_strided_slice %185 {offsets = [0, 96], sizes = [2, 32], strides = [1, 1]} : vector<2x128xf32> to vector<2x32xf32>
    %201 = arith.negf %200 : vector<2x32xf32>
    %202 = math.exp %201 : vector<2x32xf32>
    %cst_45 = arith.constant 1.000000e+00 : f32
    %203 = vector.broadcast %cst_45 : f32 to vector<2x32xf32>
    %204 = arith.addf %203, %202 : vector<2x32xf32>
    %205 = arith.divf %203, %204 : vector<2x32xf32>
    %206 = arith.mulf %197, %180 : vector<2x32xf32>
    %207 = arith.mulf %191, %199 : vector<2x32xf32>
    %208 = arith.addf %206, %207 : vector<2x32xf32>
    %209 = math.tanh %208 : vector<2x32xf32>
    %210 = arith.mulf %205, %209 : vector<2x32xf32>
    %211 = vector.extract_strided_slice %14 {offsets = [14, 0], sizes = [2, 128], strides = [1, 1]} : vector<16x128xf32> to vector<2x128xf32>
    %cst_46 = arith.constant dense<0.000000e+00> : vector<2x128xf32>
    %212 = tpu.matmul %210, %10, %cst_46 {dimension_numbers = #tpu.dot_dimension_numbers<[1], [0], [0], [1], [0, 0, 1, 1], [], []>} : vector<2x32xf32>, vector<32x128xf32>, vector<2x128xf32> -> vector<2x128xf32>
    %213 = arith.addf %211, %212 : vector<2x128xf32>
    %214 = vector.extract_strided_slice %213 {offsets = [0, 0], sizes = [2, 32], strides = [1, 1]} : vector<2x128xf32> to vector<2x32xf32>
    %215 = arith.negf %214 : vector<2x32xf32>
    %216 = math.exp %215 : vector<2x32xf32>
    %cst_47 = arith.constant 1.000000e+00 : f32
    %217 = vector.broadcast %cst_47 : f32 to vector<2x32xf32>
    %218 = arith.addf %217, %216 : vector<2x32xf32>
    %219 = arith.divf %217, %218 : vector<2x32xf32>
    %220 = vector.extract_strided_slice %213 {offsets = [0, 32], sizes = [2, 32], strides = [1, 1]} : vector<2x128xf32> to vector<2x32xf32>
    %221 = arith.negf %220 : vector<2x32xf32>
    %222 = math.exp %221 : vector<2x32xf32>
    %cst_48 = arith.constant 1.000000e+00 : f32
    %223 = vector.broadcast %cst_48 : f32 to vector<2x32xf32>
    %224 = arith.addf %223, %222 : vector<2x32xf32>
    %225 = arith.divf %223, %224 : vector<2x32xf32>
    %226 = vector.extract_strided_slice %213 {offsets = [0, 64], sizes = [2, 32], strides = [1, 1]} : vector<2x128xf32> to vector<2x32xf32>
    %227 = math.tanh %226 : vector<2x32xf32>
    %228 = vector.extract_strided_slice %213 {offsets = [0, 96], sizes = [2, 32], strides = [1, 1]} : vector<2x128xf32> to vector<2x32xf32>
    %229 = arith.negf %228 : vector<2x32xf32>
    %230 = math.exp %229 : vector<2x32xf32>
    %cst_49 = arith.constant 1.000000e+00 : f32
    %231 = vector.broadcast %cst_49 : f32 to vector<2x32xf32>
    %232 = arith.addf %231, %230 : vector<2x32xf32>
    %233 = arith.divf %231, %232 : vector<2x32xf32>
    %234 = arith.mulf %225, %208 : vector<2x32xf32>
    %235 = arith.mulf %219, %227 : vector<2x32xf32>
    %236 = arith.addf %234, %235 : vector<2x32xf32>
    %237 = math.tanh %236 : vector<2x32xf32>
    %238 = arith.mulf %233, %237 : vector<2x32xf32>
    %c0_50 = arith.constant 0 : index
    %c0_51 = arith.constant 0 : index
    %c0_52 = arith.constant 0 : index
    %239 = vector.load %arg12[%c0_50, %c0_51, %c0_52] : memref<2x2x32xf32, #tpu.memory_space<vmem>>, vector<1x2x32xf32>
    %240 = vector.shape_cast %239 : vector<1x2x32xf32> to vector<2x32xf32>
    %241 = vector.shape_cast %238 : vector<2x32xf32> to vector<1x2x32xf32>
    tpu.vector_store %arg12[%c0_50, %c0_51, %c0_52], %241 {strides = array<i32>} : memref<2x2x32xf32, #tpu.memory_space<vmem>>, vector<1x2x32xf32>,
    %c0_53 = arith.constant 0 : index
    %c0_54 = arith.constant 0 : index
    %c0_55 = arith.constant 0 : index
    %242 = vector.load %arg13[%c0_53, %c0_54, %c0_55] : memref<2x2x32xf32, #tpu.memory_space<vmem>>, vector<1x2x32xf32>
    %243 = vector.shape_cast %242 : vector<1x2x32xf32> to vector<2x32xf32>
    %244 = vector.shape_cast %236 : vector<2x32xf32> to vector<1x2x32xf32>
    tpu.vector_store %arg13[%c0_53, %c0_54, %c0_55], %244 {strides = array<i32>} : memref<2x2x32xf32, #tpu.memory_space<vmem>>, vector<1x2x32xf32>,
    %245 = tpu.concatenate %42, %70, %98, %126, %154, %182, %210, %238 in 0 : vector<2x32xf32>, vector<2x32xf32>, vector<2x32xf32>, vector<2x32xf32>, vector<2x32xf32>, vector<2x32xf32>, vector<2x32xf32>, vector<2x32xf32> -> vector<16x32xf32>
    %c0_56 = arith.constant 0 : index
    %c0_57 = arith.constant 0 : index
    %246 = vector.load %arg4[%c0_56, %c0_57] : memref<32x128xf32, #tpu.memory_space<vmem>>, vector<32x128xf32>
    %c0_58 = arith.constant 0 : index
    %c0_59 = arith.constant 0 : index
    %247 = vector.load %arg5[%c0_58, %c0_59] : memref<32x128xf32, #tpu.memory_space<vmem>>, vector<32x128xf32>
    %c0_60 = arith.constant 0 : index
    %c0_61 = arith.constant 0 : index
    %248 = vector.load %arg6[%c0_60, %c0_61] : memref<1x128xf32, #tpu.memory_space<vmem>>, vector<1x128xf32>
    %cst_62 = arith.constant dense<0.000000e+00> : vector<16x128xf32>
    %249 = tpu.matmul %245, %246, %cst_62 {dimension_numbers = #tpu.dot_dimension_numbers<[1], [0], [0], [1], [0, 0, 1, 1], [], []>} : vector<16x32xf32>, vector<32x128xf32>, vector<16x128xf32> -> vector<16x128xf32>
    %250 = vector.broadcast %248 : vector<1x128xf32> to vector<16x128xf32>
    %251 = arith.addf %249, %250 : vector<16x128xf32>
    %252 = vector.extract_strided_slice %251 {offsets = [0, 0], sizes = [2, 128], strides = [1, 1]} : vector<16x128xf32> to vector<2x128xf32>
    %cst_63 = arith.constant dense<0.000000e+00> : vector<2x128xf32>
    %253 = tpu.matmul %3, %247, %cst_63 {dimension_numbers = #tpu.dot_dimension_numbers<[1], [0], [0], [1], [0, 0, 1, 1], [], []>} : vector<2x32xf32>, vector<32x128xf32>, vector<2x128xf32> -> vector<2x128xf32>
    %254 = arith.addf %252, %253 : vector<2x128xf32>
    %255 = vector.extract_strided_slice %254 {offsets = [0, 0], sizes = [2, 32], strides = [1, 1]} : vector<2x128xf32> to vector<2x32xf32>
    %256 = arith.negf %255 : vector<2x32xf32>
    %257 = math.exp %256 : vector<2x32xf32>
    %cst_64 = arith.constant 1.000000e+00 : f32
    %258 = vector.broadcast %cst_64 : f32 to vector<2x32xf32>
    %259 = arith.addf %258, %257 : vector<2x32xf32>
    %260 = arith.divf %258, %259 : vector<2x32xf32>
    %261 = vector.extract_strided_slice %254 {offsets = [0, 32], sizes = [2, 32], strides = [1, 1]} : vector<2x128xf32> to vector<2x32xf32>
    %262 = arith.negf %261 : vector<2x32xf32>
    %263 = math.exp %262 : vector<2x32xf32>
    %cst_65 = arith.constant 1.000000e+00 : f32
    %264 = vector.broadcast %cst_65 : f32 to vector<2x32xf32>
    %265 = arith.addf %264, %263 : vector<2x32xf32>
    %266 = arith.divf %264, %265 : vector<2x32xf32>
    %267 = vector.extract_strided_slice %254 {offsets = [0, 64], sizes = [2, 32], strides = [1, 1]} : vector<2x128xf32> to vector<2x32xf32>
    %268 = math.tanh %267 : vector<2x32xf32>
    %269 = vector.extract_strided_slice %254 {offsets = [0, 96], sizes = [2, 32], strides = [1, 1]} : vector<2x128xf32> to vector<2x32xf32>
    %270 = arith.negf %269 : vector<2x32xf32>
    %271 = math.exp %270 : vector<2x32xf32>
    %cst_66 = arith.constant 1.000000e+00 : f32
    %272 = vector.broadcast %cst_66 : f32 to vector<2x32xf32>
    %273 = arith.addf %272, %271 : vector<2x32xf32>
    %274 = arith.divf %272, %273 : vector<2x32xf32>
    %275 = arith.mulf %266, %7 : vector<2x32xf32>
    %276 = arith.mulf %260, %268 : vector<2x32xf32>
    %277 = arith.addf %275, %276 : vector<2x32xf32>
    %278 = math.tanh %277 : vector<2x32xf32>
    %279 = arith.mulf %274, %278 : vector<2x32xf32>
    %280 = vector.extract_strided_slice %251 {offsets = [2, 0], sizes = [2, 128], strides = [1, 1]} : vector<16x128xf32> to vector<2x128xf32>
    %cst_67 = arith.constant dense<0.000000e+00> : vector<2x128xf32>
    %281 = tpu.matmul %279, %247, %cst_67 {dimension_numbers = #tpu.dot_dimension_numbers<[1], [0], [0], [1], [0, 0, 1, 1], [], []>} : vector<2x32xf32>, vector<32x128xf32>, vector<2x128xf32> -> vector<2x128xf32>
    %282 = arith.addf %280, %281 : vector<2x128xf32>
    %283 = vector.extract_strided_slice %282 {offsets = [0, 0], sizes = [2, 32], strides = [1, 1]} : vector<2x128xf32> to vector<2x32xf32>
    %284 = arith.negf %283 : vector<2x32xf32>
    %285 = math.exp %284 : vector<2x32xf32>
    %cst_68 = arith.constant 1.000000e+00 : f32
    %286 = vector.broadcast %cst_68 : f32 to vector<2x32xf32>
    %287 = arith.addf %286, %285 : vector<2x32xf32>
    %288 = arith.divf %286, %287 : vector<2x32xf32>
    %289 = vector.extract_strided_slice %282 {offsets = [0, 32], sizes = [2, 32], strides = [1, 1]} : vector<2x128xf32> to vector<2x32xf32>
    %290 = arith.negf %289 : vector<2x32xf32>
    %291 = math.exp %290 : vector<2x32xf32>
    %cst_69 = arith.constant 1.000000e+00 : f32
    %292 = vector.broadcast %cst_69 : f32 to vector<2x32xf32>
    %293 = arith.addf %292, %291 : vector<2x32xf32>
    %294 = arith.divf %292, %293 : vector<2x32xf32>
    %295 = vector.extract_strided_slice %282 {offsets = [0, 64], sizes = [2, 32], strides = [1, 1]} : vector<2x128xf32> to vector<2x32xf32>
    %296 = math.tanh %295 : vector<2x32xf32>
    %297 = vector.extract_strided_slice %282 {offsets = [0, 96], sizes = [2, 32], strides = [1, 1]} : vector<2x128xf32> to vector<2x32xf32>
    %298 = arith.negf %297 : vector<2x32xf32>
    %299 = math.exp %298 : vector<2x32xf32>
    %cst_70 = arith.constant 1.000000e+00 : f32
    %300 = vector.broadcast %cst_70 : f32 to vector<2x32xf32>
    %301 = arith.addf %300, %299 : vector<2x32xf32>
    %302 = arith.divf %300, %301 : vector<2x32xf32>
    %303 = arith.mulf %294, %277 : vector<2x32xf32>
    %304 = arith.mulf %288, %296 : vector<2x32xf32>
    %305 = arith.addf %303, %304 : vector<2x32xf32>
    %306 = math.tanh %305 : vector<2x32xf32>
    %307 = arith.mulf %302, %306 : vector<2x32xf32>
    %308 = vector.extract_strided_slice %251 {offsets = [4, 0], sizes = [2, 128], strides = [1, 1]} : vector<16x128xf32> to vector<2x128xf32>
    %cst_71 = arith.constant dense<0.000000e+00> : vector<2x128xf32>
    %309 = tpu.matmul %307, %247, %cst_71 {dimension_numbers = #tpu.dot_dimension_numbers<[1], [0], [0], [1], [0, 0, 1, 1], [], []>} : vector<2x32xf32>, vector<32x128xf32>, vector<2x128xf32> -> vector<2x128xf32>
    %310 = arith.addf %308, %309 : vector<2x128xf32>
    %311 = vector.extract_strided_slice %310 {offsets = [0, 0], sizes = [2, 32], strides = [1, 1]} : vector<2x128xf32> to vector<2x32xf32>
    %312 = arith.negf %311 : vector<2x32xf32>
    %313 = math.exp %312 : vector<2x32xf32>
    %cst_72 = arith.constant 1.000000e+00 : f32
    %314 = vector.broadcast %cst_72 : f32 to vector<2x32xf32>
    %315 = arith.addf %314, %313 : vector<2x32xf32>
    %316 = arith.divf %314, %315 : vector<2x32xf32>
    %317 = vector.extract_strided_slice %310 {offsets = [0, 32], sizes = [2, 32], strides = [1, 1]} : vector<2x128xf32> to vector<2x32xf32>
    %318 = arith.negf %317 : vector<2x32xf32>
    %319 = math.exp %318 : vector<2x32xf32>
    %cst_73 = arith.constant 1.000000e+00 : f32
    %320 = vector.broadcast %cst_73 : f32 to vector<2x32xf32>
    %321 = arith.addf %320, %319 : vector<2x32xf32>
    %322 = arith.divf %320, %321 : vector<2x32xf32>
    %323 = vector.extract_strided_slice %310 {offsets = [0, 64], sizes = [2, 32], strides = [1, 1]} : vector<2x128xf32> to vector<2x32xf32>
    %324 = math.tanh %323 : vector<2x32xf32>
    %325 = vector.extract_strided_slice %310 {offsets = [0, 96], sizes = [2, 32], strides = [1, 1]} : vector<2x128xf32> to vector<2x32xf32>
    %326 = arith.negf %325 : vector<2x32xf32>
    %327 = math.exp %326 : vector<2x32xf32>
    %cst_74 = arith.constant 1.000000e+00 : f32
    %328 = vector.broadcast %cst_74 : f32 to vector<2x32xf32>
    %329 = arith.addf %328, %327 : vector<2x32xf32>
    %330 = arith.divf %328, %329 : vector<2x32xf32>
    %331 = arith.mulf %322, %305 : vector<2x32xf32>
    %332 = arith.mulf %316, %324 : vector<2x32xf32>
    %333 = arith.addf %331, %332 : vector<2x32xf32>
    %334 = math.tanh %333 : vector<2x32xf32>
    %335 = arith.mulf %330, %334 : vector<2x32xf32>
    %336 = vector.extract_strided_slice %251 {offsets = [6, 0], sizes = [2, 128], strides = [1, 1]} : vector<16x128xf32> to vector<2x128xf32>
    %cst_75 = arith.constant dense<0.000000e+00> : vector<2x128xf32>
    %337 = tpu.matmul %335, %247, %cst_75 {dimension_numbers = #tpu.dot_dimension_numbers<[1], [0], [0], [1], [0, 0, 1, 1], [], []>} : vector<2x32xf32>, vector<32x128xf32>, vector<2x128xf32> -> vector<2x128xf32>
    %338 = arith.addf %336, %337 : vector<2x128xf32>
    %339 = vector.extract_strided_slice %338 {offsets = [0, 0], sizes = [2, 32], strides = [1, 1]} : vector<2x128xf32> to vector<2x32xf32>
    %340 = arith.negf %339 : vector<2x32xf32>
    %341 = math.exp %340 : vector<2x32xf32>
    %cst_76 = arith.constant 1.000000e+00 : f32
    %342 = vector.broadcast %cst_76 : f32 to vector<2x32xf32>
    %343 = arith.addf %342, %341 : vector<2x32xf32>
    %344 = arith.divf %342, %343 : vector<2x32xf32>
    %345 = vector.extract_strided_slice %338 {offsets = [0, 32], sizes = [2, 32], strides = [1, 1]} : vector<2x128xf32> to vector<2x32xf32>
    %346 = arith.negf %345 : vector<2x32xf32>
    %347 = math.exp %346 : vector<2x32xf32>
    %cst_77 = arith.constant 1.000000e+00 : f32
    %348 = vector.broadcast %cst_77 : f32 to vector<2x32xf32>
    %349 = arith.addf %348, %347 : vector<2x32xf32>
    %350 = arith.divf %348, %349 : vector<2x32xf32>
    %351 = vector.extract_strided_slice %338 {offsets = [0, 64], sizes = [2, 32], strides = [1, 1]} : vector<2x128xf32> to vector<2x32xf32>
    %352 = math.tanh %351 : vector<2x32xf32>
    %353 = vector.extract_strided_slice %338 {offsets = [0, 96], sizes = [2, 32], strides = [1, 1]} : vector<2x128xf32> to vector<2x32xf32>
    %354 = arith.negf %353 : vector<2x32xf32>
    %355 = math.exp %354 : vector<2x32xf32>
    %cst_78 = arith.constant 1.000000e+00 : f32
    %356 = vector.broadcast %cst_78 : f32 to vector<2x32xf32>
    %357 = arith.addf %356, %355 : vector<2x32xf32>
    %358 = arith.divf %356, %357 : vector<2x32xf32>
    %359 = arith.mulf %350, %333 : vector<2x32xf32>
    %360 = arith.mulf %344, %352 : vector<2x32xf32>
    %361 = arith.addf %359, %360 : vector<2x32xf32>
    %362 = math.tanh %361 : vector<2x32xf32>
    %363 = arith.mulf %358, %362 : vector<2x32xf32>
    %364 = vector.extract_strided_slice %251 {offsets = [8, 0], sizes = [2, 128], strides = [1, 1]} : vector<16x128xf32> to vector<2x128xf32>
    %cst_79 = arith.constant dense<0.000000e+00> : vector<2x128xf32>
    %365 = tpu.matmul %363, %247, %cst_79 {dimension_numbers = #tpu.dot_dimension_numbers<[1], [0], [0], [1], [0, 0, 1, 1], [], []>} : vector<2x32xf32>, vector<32x128xf32>, vector<2x128xf32> -> vector<2x128xf32>
    %366 = arith.addf %364, %365 : vector<2x128xf32>
    %367 = vector.extract_strided_slice %366 {offsets = [0, 0], sizes = [2, 32], strides = [1, 1]} : vector<2x128xf32> to vector<2x32xf32>
    %368 = arith.negf %367 : vector<2x32xf32>
    %369 = math.exp %368 : vector<2x32xf32>
    %cst_80 = arith.constant 1.000000e+00 : f32
    %370 = vector.broadcast %cst_80 : f32 to vector<2x32xf32>
    %371 = arith.addf %370, %369 : vector<2x32xf32>
    %372 = arith.divf %370, %371 : vector<2x32xf32>
    %373 = vector.extract_strided_slice %366 {offsets = [0, 32], sizes = [2, 32], strides = [1, 1]} : vector<2x128xf32> to vector<2x32xf32>
    %374 = arith.negf %373 : vector<2x32xf32>
    %375 = math.exp %374 : vector<2x32xf32>
    %cst_81 = arith.constant 1.000000e+00 : f32
    %376 = vector.broadcast %cst_81 : f32 to vector<2x32xf32>
    %377 = arith.addf %376, %375 : vector<2x32xf32>
    %378 = arith.divf %376, %377 : vector<2x32xf32>
    %379 = vector.extract_strided_slice %366 {offsets = [0, 64], sizes = [2, 32], strides = [1, 1]} : vector<2x128xf32> to vector<2x32xf32>
    %380 = math.tanh %379 : vector<2x32xf32>
    %381 = vector.extract_strided_slice %366 {offsets = [0, 96], sizes = [2, 32], strides = [1, 1]} : vector<2x128xf32> to vector<2x32xf32>
    %382 = arith.negf %381 : vector<2x32xf32>
    %383 = math.exp %382 : vector<2x32xf32>
    %cst_82 = arith.constant 1.000000e+00 : f32
    %384 = vector.broadcast %cst_82 : f32 to vector<2x32xf32>
    %385 = arith.addf %384, %383 : vector<2x32xf32>
    %386 = arith.divf %384, %385 : vector<2x32xf32>
    %387 = arith.mulf %378, %361 : vector<2x32xf32>
    %388 = arith.mulf %372, %380 : vector<2x32xf32>
    %389 = arith.addf %387, %388 : vector<2x32xf32>
    %390 = math.tanh %389 : vector<2x32xf32>
    %391 = arith.mulf %386, %390 : vector<2x32xf32>
    %392 = vector.extract_strided_slice %251 {offsets = [10, 0], sizes = [2, 128], strides = [1, 1]} : vector<16x128xf32> to vector<2x128xf32>
    %cst_83 = arith.constant dense<0.000000e+00> : vector<2x128xf32>
    %393 = tpu.matmul %391, %247, %cst_83 {dimension_numbers = #tpu.dot_dimension_numbers<[1], [0], [0], [1], [0, 0, 1, 1], [], []>} : vector<2x32xf32>, vector<32x128xf32>, vector<2x128xf32> -> vector<2x128xf32>
    %394 = arith.addf %392, %393 : vector<2x128xf32>
    %395 = vector.extract_strided_slice %394 {offsets = [0, 0], sizes = [2, 32], strides = [1, 1]} : vector<2x128xf32> to vector<2x32xf32>
    %396 = arith.negf %395 : vector<2x32xf32>
    %397 = math.exp %396 : vector<2x32xf32>
    %cst_84 = arith.constant 1.000000e+00 : f32
    %398 = vector.broadcast %cst_84 : f32 to vector<2x32xf32>
    %399 = arith.addf %398, %397 : vector<2x32xf32>
    %400 = arith.divf %398, %399 : vector<2x32xf32>
    %401 = vector.extract_strided_slice %394 {offsets = [0, 32], sizes = [2, 32], strides = [1, 1]} : vector<2x128xf32> to vector<2x32xf32>
    %402 = arith.negf %401 : vector<2x32xf32>
    %403 = math.exp %402 : vector<2x32xf32>
    %cst_85 = arith.constant 1.000000e+00 : f32
    %404 = vector.broadcast %cst_85 : f32 to vector<2x32xf32>
    %405 = arith.addf %404, %403 : vector<2x32xf32>
    %406 = arith.divf %404, %405 : vector<2x32xf32>
    %407 = vector.extract_strided_slice %394 {offsets = [0, 64], sizes = [2, 32], strides = [1, 1]} : vector<2x128xf32> to vector<2x32xf32>
    %408 = math.tanh %407 : vector<2x32xf32>
    %409 = vector.extract_strided_slice %394 {offsets = [0, 96], sizes = [2, 32], strides = [1, 1]} : vector<2x128xf32> to vector<2x32xf32>
    %410 = arith.negf %409 : vector<2x32xf32>
    %411 = math.exp %410 : vector<2x32xf32>
    %cst_86 = arith.constant 1.000000e+00 : f32
    %412 = vector.broadcast %cst_86 : f32 to vector<2x32xf32>
    %413 = arith.addf %412, %411 : vector<2x32xf32>
    %414 = arith.divf %412, %413 : vector<2x32xf32>
    %415 = arith.mulf %406, %389 : vector<2x32xf32>
    %416 = arith.mulf %400, %408 : vector<2x32xf32>
    %417 = arith.addf %415, %416 : vector<2x32xf32>
    %418 = math.tanh %417 : vector<2x32xf32>
    %419 = arith.mulf %414, %418 : vector<2x32xf32>
    %420 = vector.extract_strided_slice %251 {offsets = [12, 0], sizes = [2, 128], strides = [1, 1]} : vector<16x128xf32> to vector<2x128xf32>
    %cst_87 = arith.constant dense<0.000000e+00> : vector<2x128xf32>
    %421 = tpu.matmul %419, %247, %cst_87 {dimension_numbers = #tpu.dot_dimension_numbers<[1], [0], [0], [1], [0, 0, 1, 1], [], []>} : vector<2x32xf32>, vector<32x128xf32>, vector<2x128xf32> -> vector<2x128xf32>
    %422 = arith.addf %420, %421 : vector<2x128xf32>
    %423 = vector.extract_strided_slice %422 {offsets = [0, 0], sizes = [2, 32], strides = [1, 1]} : vector<2x128xf32> to vector<2x32xf32>
    %424 = arith.negf %423 : vector<2x32xf32>
    %425 = math.exp %424 : vector<2x32xf32>
    %cst_88 = arith.constant 1.000000e+00 : f32
    %426 = vector.broadcast %cst_88 : f32 to vector<2x32xf32>
    %427 = arith.addf %426, %425 : vector<2x32xf32>
    %428 = arith.divf %426, %427 : vector<2x32xf32>
    %429 = vector.extract_strided_slice %422 {offsets = [0, 32], sizes = [2, 32], strides = [1, 1]} : vector<2x128xf32> to vector<2x32xf32>
    %430 = arith.negf %429 : vector<2x32xf32>
    %431 = math.exp %430 : vector<2x32xf32>
    %cst_89 = arith.constant 1.000000e+00 : f32
    %432 = vector.broadcast %cst_89 : f32 to vector<2x32xf32>
    %433 = arith.addf %432, %431 : vector<2x32xf32>
    %434 = arith.divf %432, %433 : vector<2x32xf32>
    %435 = vector.extract_strided_slice %422 {offsets = [0, 64], sizes = [2, 32], strides = [1, 1]} : vector<2x128xf32> to vector<2x32xf32>
    %436 = math.tanh %435 : vector<2x32xf32>
    %437 = vector.extract_strided_slice %422 {offsets = [0, 96], sizes = [2, 32], strides = [1, 1]} : vector<2x128xf32> to vector<2x32xf32>
    %438 = arith.negf %437 : vector<2x32xf32>
    %439 = math.exp %438 : vector<2x32xf32>
    %cst_90 = arith.constant 1.000000e+00 : f32
    %440 = vector.broadcast %cst_90 : f32 to vector<2x32xf32>
    %441 = arith.addf %440, %439 : vector<2x32xf32>
    %442 = arith.divf %440, %441 : vector<2x32xf32>
    %443 = arith.mulf %434, %417 : vector<2x32xf32>
    %444 = arith.mulf %428, %436 : vector<2x32xf32>
    %445 = arith.addf %443, %444 : vector<2x32xf32>
    %446 = math.tanh %445 : vector<2x32xf32>
    %447 = arith.mulf %442, %446 : vector<2x32xf32>
    %448 = vector.extract_strided_slice %251 {offsets = [14, 0], sizes = [2, 128], strides = [1, 1]} : vector<16x128xf32> to vector<2x128xf32>
    %cst_91 = arith.constant dense<0.000000e+00> : vector<2x128xf32>
    %449 = tpu.matmul %447, %247, %cst_91 {dimension_numbers = #tpu.dot_dimension_numbers<[1], [0], [0], [1], [0, 0, 1, 1], [], []>} : vector<2x32xf32>, vector<32x128xf32>, vector<2x128xf32> -> vector<2x128xf32>
    %450 = arith.addf %448, %449 : vector<2x128xf32>
    %451 = vector.extract_strided_slice %450 {offsets = [0, 0], sizes = [2, 32], strides = [1, 1]} : vector<2x128xf32> to vector<2x32xf32>
    %452 = arith.negf %451 : vector<2x32xf32>
    %453 = math.exp %452 : vector<2x32xf32>
    %cst_92 = arith.constant 1.000000e+00 : f32
    %454 = vector.broadcast %cst_92 : f32 to vector<2x32xf32>
    %455 = arith.addf %454, %453 : vector<2x32xf32>
    %456 = arith.divf %454, %455 : vector<2x32xf32>
    %457 = vector.extract_strided_slice %450 {offsets = [0, 32], sizes = [2, 32], strides = [1, 1]} : vector<2x128xf32> to vector<2x32xf32>
    %458 = arith.negf %457 : vector<2x32xf32>
    %459 = math.exp %458 : vector<2x32xf32>
    %cst_93 = arith.constant 1.000000e+00 : f32
    %460 = vector.broadcast %cst_93 : f32 to vector<2x32xf32>
    %461 = arith.addf %460, %459 : vector<2x32xf32>
    %462 = arith.divf %460, %461 : vector<2x32xf32>
    %463 = vector.extract_strided_slice %450 {offsets = [0, 64], sizes = [2, 32], strides = [1, 1]} : vector<2x128xf32> to vector<2x32xf32>
    %464 = math.tanh %463 : vector<2x32xf32>
    %465 = vector.extract_strided_slice %450 {offsets = [0, 96], sizes = [2, 32], strides = [1, 1]} : vector<2x128xf32> to vector<2x32xf32>
    %466 = arith.negf %465 : vector<2x32xf32>
    %467 = math.exp %466 : vector<2x32xf32>
    %cst_94 = arith.constant 1.000000e+00 : f32
    %468 = vector.broadcast %cst_94 : f32 to vector<2x32xf32>
    %469 = arith.addf %468, %467 : vector<2x32xf32>
    %470 = arith.divf %468, %469 : vector<2x32xf32>
    %471 = arith.mulf %462, %445 : vector<2x32xf32>
    %472 = arith.mulf %456, %464 : vector<2x32xf32>
    %473 = arith.addf %471, %472 : vector<2x32xf32>
    %474 = math.tanh %473 : vector<2x32xf32>
    %475 = arith.mulf %470, %474 : vector<2x32xf32>
    %c1_95 = arith.constant 1 : index
    %c0_96 = arith.constant 0 : index
    %c0_97 = arith.constant 0 : index
    %476 = vector.load %arg12[%c1_95, %c0_96, %c0_97] : memref<2x2x32xf32, #tpu.memory_space<vmem>>, vector<1x2x32xf32>
    %477 = vector.shape_cast %476 : vector<1x2x32xf32> to vector<2x32xf32>
    %478 = vector.shape_cast %475 : vector<2x32xf32> to vector<1x2x32xf32>
    tpu.vector_store %arg12[%c1_95, %c0_96, %c0_97], %478 {strides = array<i32>} : memref<2x2x32xf32, #tpu.memory_space<vmem>>, vector<1x2x32xf32>,
    %c1_98 = arith.constant 1 : index
    %c0_99 = arith.constant 0 : index
    %c0_100 = arith.constant 0 : index
    %479 = vector.load %arg13[%c1_98, %c0_99, %c0_100] : memref<2x2x32xf32, #tpu.memory_space<vmem>>, vector<1x2x32xf32>
    %480 = vector.shape_cast %479 : vector<1x2x32xf32> to vector<2x32xf32>
    %481 = vector.shape_cast %473 : vector<2x32xf32> to vector<1x2x32xf32>
    tpu.vector_store %arg13[%c1_98, %c0_99, %c0_100], %481 {strides = array<i32>} : memref<2x2x32xf32, #tpu.memory_space<vmem>>, vector<1x2x32xf32>,
    %482 = tpu.concatenate %279, %307, %335, %363, %391, %419, %447, %475 in 0 : vector<2x32xf32>, vector<2x32xf32>, vector<2x32xf32>, vector<2x32xf32>, vector<2x32xf32>, vector<2x32xf32>, vector<2x32xf32>, vector<2x32xf32> -> vector<16x32xf32>
    %c0_101 = arith.constant 0 : index
    %c0_102 = arith.constant 0 : index
    %483 = vector.load %arg9[%c0_101, %c0_102] : memref<32x128xf32, #tpu.memory_space<vmem>>, vector<32x128xf32>
    %cst_103 = arith.constant dense<0.000000e+00> : vector<16x128xf32>
    %484 = tpu.matmul %482, %483, %cst_103 {dimension_numbers = #tpu.dot_dimension_numbers<[1], [0], [0], [1], [0, 0, 1, 1], [], []>} : vector<16x32xf32>, vector<32x128xf32>, vector<16x128xf32> -> vector<16x128xf32>
    %c0_104 = arith.constant 0 : index
    %c0_105 = arith.constant 0 : index
    %485 = vector.load %arg10[%c0_104, %c0_105] : memref<1x128xf32, #tpu.memory_space<vmem>>, vector<1x128xf32>
    %486 = vector.broadcast %485 : vector<1x128xf32> to vector<16x128xf32>
    %487 = arith.addf %484, %486 : vector<16x128xf32>
    %c0_106 = arith.constant 0 : index
    %c0_107 = arith.constant 0 : index
    %488 = vector.load %arg11[%c0_106, %c0_107] : memref<16x128xf32, #tpu.memory_space<vmem>>, vector<16x128xf32>
    tpu.vector_store %arg11[%c0_106, %c0_107], %487 {strides = array<i32>} : memref<16x128xf32, #tpu.memory_space<vmem>>, vector<16x128xf32>,
    return
  }
}

</mosaic_0001>

<bundles_post_ra>
// kernel: alice_forward_impl.1
= control target key start
LH: loop header
LB: loop body
LE: loop exit
PB: predicated region body
PF: predicated region fallthrough
CT: control target
= control target key end

     0   :  { %vm58_vm0 = vcmask 64512   ;;  %vm88_vm1 = vcmask 261120   ;;  %s1504_s23 = smov 64   ;;  %s1505_s26 = smov 32   ;;  %vm650_vm14 = vcmask 1041408   ;;  %vm652_vm15 = vcmask 1043456   ;;  %s1917_s1 = inlined_call_operand.vmem [shape: f32[8,128], index: 1, kind: input, shape index: {}]   ;;  %s1918_s0 = inlined_call_operand.vmem [shape: f32[16,8], index: 0, kind: input, shape index: {}]   ;;  %s1919_s2 = inlined_call_operand.vmem [shape: f32[32,128], index: 2, kind: input, shape index: {}]   ;;  %s1920_s3 = inlined_call_operand.vmem [shape: f32[1,128], index: 3, kind: input, shape index: {}]   ;;  %s1921_s7 = inlined_call_operand.vmem [shape: f32[2,2,32], index: 7, kind: input, shape index: {}, may-alias: {7,12}]   ;;  %s1922_s8 = inlined_call_operand.vmem [shape: f32[2,2,32], index: 8, kind: input, shape index: {}, may-alias: {8,13}]   ;;  %s1923_s4 = inlined_call_operand.vmem [shape: f32[32,128], index: 4, kind: input, shape index: {}]   ;;  %s1924_s6 = inlined_call_operand.vmem [shape: f32[1,128], index: 6, kind: input, shape index: {}]   ;;  %s1925_s5 = inlined_call_operand.vmem [shape: f32[32,128], index: 5, kind: input, shape index: {}]   ;;  %s1926_s9 = inlined_call_operand.vmem [shape: f32[32,128], index: 9, kind: input, shape index: {}]   ;;  %s1927_s10 = inlined_call_operand.vmem [shape: f32[1,128], index: 10, kind: input, shape index: {}]   ;;  %s1928_s13 = inlined_call_operand.vmem [shape: f32[2,2,32], index: 13, kind: output, shape index: {2}, may-alias: {8,13}]   ;;  %s1929_s11 = inlined_call_operand.vmem [shape: f32[16,128], index: 11, kind: output, shape index: {0}]   ;;  %s1930_s12 = inlined_call_operand.vmem [shape: f32[2,2,32], index: 12, kind: output, shape index: {1}, may-alias: {7,12}]  }
   0x1   :  { %v49_v0 = vld [vmem:[%s1917_s1] sm:$0xff]  ;;  %v48_v1 = vld [vmem:[%s1918_s0 + $0x8] sm:$0xff]  ;;  %v53_v2 = vld [vmem:[%s1919_s2 + $0x18] sm:$0xff] }
   0x2   :  { %1369 = vmatpush.msra.mxu1 %v49_v0  ;;  %80 = vmatpush.msra.mxu0 %v49_v0  ;;  %v47_v3 = vld [vmem:[%s1918_s0] sm:$0xff]  ;;  %v52_v4 = vld [vmem:[%s1919_s2 + $0x10] sm:$0xff]  ;;  %v51_v5 = vld [vmem:[%s1919_s2 + $0x8] sm:$0xff] }
   0x3   :  { %1330 = vmatmul.msk.f32.vlgmr.msra.gmra.mxu1 %vm58_vm0, %v48_v1  ;;  %1329 = vmatmul.msk.f32.vlgmr.msra.gmra.mxu0 %vm58_vm0, %v47_v3  ;;  %v50_v6 = vld [vmem:[%s1919_s2] sm:$0xff] }
   0x4   :  { %104 = vmatpush.msrb.mxu1 %v53_v2  ;;  %171 = vmatpush.msra.mxu2 %v53_v2  ;;  %v41_v7 = vld [vmem:[%s1921_s7] sm:$0x3] }
   0x5   :  { %241 = vmatpush.msra.mxu3 %v53_v2  ;;  %517 = vmatpush.msrb.mxu0 %v53_v2  ;;  %v1373_v8 = vld [vmem:[%s1920_s3] ss:$0 sm:$0xff] }
   0x6   :  { %105 = vmatpush.msrb.mxu1 %v52_v4  ;;  %172 = vmatpush.msra.mxu2 %v52_v4  ;;  %v44_v16 = vld [vmem:[%s1922_s8] sm:$0x3] }
   0x7   :  { %242 = vmatpush.msra.mxu3 %v52_v4  ;;  %518 = vmatpush.msrb.mxu0 %v52_v4 }
   0x8   :  { %106 = vmatpush.msrb.mxu1 %v51_v5  ;;  %173 = vmatpush.msra.mxu2 %v51_v5 }
   0x9   :  { %243 = vmatpush.msra.mxu3 %v51_v5  ;;  %519 = vmatpush.msrb.mxu0 %v51_v5 }
   0xa   :  { %107 = vmatpush.msrb.mxu1 %v50_v6  ;;  %174 = vmatpush.msra.mxu2 %v50_v6 }
   0xb   :  { %1331 = vmatmul.msk.f32.vlgmr.msrb.gmra.mxu1 %vm88_vm1, %v41_v7  ;;  %244 = vmatpush.msra.mxu3 %v50_v6 }
   0xc   :  { %311 = vmatpush.msra.mxu1 %v53_v2  ;;  %381 = vmatpush.msrb.mxu2 %v53_v2 }
   0xd   :  { %447 = vmatpush.msrb.mxu3 %v53_v2  ;;  %520 = vmatpush.msrb.mxu0 %v50_v6 }
   0xe   :  { %312 = vmatpush.msra.mxu1 %v52_v4  ;;  %382 = vmatpush.msrb.mxu2 %v52_v4 }
   0xf   :  { %448 = vmatpush.msrb.mxu3 %v52_v4 }
  0x10   :  { %313 = vmatpush.msra.mxu1 %v51_v5  ;;  %383 = vmatpush.msrb.mxu2 %v51_v5 }
  0x11   :  { %449 = vmatpush.msrb.mxu3 %v51_v5 }
  0x12   :  { %314 = vmatpush.msra.mxu1 %v50_v6  ;;  %384 = vmatpush.msrb.mxu2 %v50_v6 }
  0x13   :  { %450 = vmatpush.msrb.mxu3 %v50_v6 }
  0x14   :  { %587 = vmatpush.msrb.mxu1 %v53_v2 }
  0x16   :  { %588 = vmatpush.msrb.mxu1 %v52_v4 }
  0x18   :  { %589 = vmatpush.msrb.mxu1 %v51_v5 }
  0x1a   :  { %590 = vmatpush.msrb.mxu1 %v50_v6 }
  0x80   :  { %v85_v9 = vpop.f32.mrf.mxu1  ;;  %v82_v11 = vpop.f32.mrf.mxu0 }
  0x81   :  { %v1605_v10 = vadd.f32 %v1373_v8, %v85_v9  ;;  %v1607_v12 = vadd.f32 %v1373_v8, %v82_v11 }
  0x88   :  { %v109_v13 = vpop.f32.mrf.mxu1 }
  0x89   :  { %v112_v14 = vadd.f32 %v109_v13, %v1607_v12 }
  0x8b   :  { %1376 = vtanh.f32 %v112_v14  ;;  %v1332_v17 = vmul.f32 -1.442695, %v112_v14 }
  0x8d   :  { %1378 = vpow2.f32 %v1332_v17 }
  0x91   :  { %v1377_v15 = vpop.eup %1376 }
  0x92   :  { %139 = vrot.lane.b32.xlu0 %v1377_v15, %s1504_s23 }
  0x93   :  { %v1379_v18 = vpop.eup %1378 }
  0x94   :  { %v116_v19 = vadd.f32 1.0, %v1379_v18 }
  0x96   :  { %1380 = vrcp.f32 %v116_v19  ;;  %v128_v25 = vand.u32 2147483648, %v116_v19  ;;  %vm122_vm3 = vweird.f32 %v116_v19  ;;  %v126_v26 = vand.u32 2147483647, %v116_v19 }
  0x98   :  { %v129_v28 = vor.u32 1.1754944e-38, %v128_v25  ;;  %vm127_vm5 = vcmp.eq.f32.partialorder %v126_v26, 8.507059e+37 }
  0x9a   :  { %134 = vrot.lane.b32.xlu0 %v44_v16, %s1505_s26 }
  0x9c   :  { %v1381_v20 = vpop.eup %1380 }
  0x9d   :  { %v118_v21 = vmul.f32 %v1381_v20, %v116_v19  ;;  %vm123_vm2 = vweird.f32 %v1381_v20 }
  0x9e   :  { %vm124_vm4 = vmor %vm122_vm3, %vm123_vm2 }
  0x9f   :  { %v119_v22 = vsub.f32 1.0, %v118_v21 }
  0xa1   :  { %v120_v23 = vmul.f32 %v1381_v20, %v119_v22 }
  0xa3   :  { %v121_v24 = vadd.f32 %v1381_v20, %v120_v23 }
  0xa5   :  { %v125_v27 = vsel %vm124_vm4, %v1381_v20, %v121_v24 }
  0xa6   :  { %v130_v30 = vsel %vm127_vm5, %v129_v28, %v125_v27  ;;  %vm654_vm5 = vcmask 1045504  }
 0x104   :  { %v140_v29 = vpop.permute.xlu0 %139 }
 0x105   :  { %v142_v31 = vmul.f32 %v140_v29, %v130_v30 }
 0x107   :  { %144 = vrot.lane.b32.xlu1 %v142_v31, %s1505_s26 }
 0x10c   :  { %v135_v32 = vpop.permute.xlu0 %134 }
 0x10d   :  { %v137_v33 = vmul.f32 %v135_v32, %v130_v30 }
 0x179   :  { %v145_v34 = vpop.permute.xlu1 %144 }
 0x17a   :  { %v147_v35 = vadd.f32 %v145_v34, %v137_v33 }
 0x17c   :  { %1382 = vtanh.f32 %v147_v35  ;;  %v204_v59 = vrot.slane %v147_v35, 6 }
 0x182   :  { %v1383_v36 = vpop.eup %1382 }
 0x183   :  { %150 = vrot.lane.b32.xlu1 %v1383_v36, %s1504_s23 }
 0x1f5   :  { %v151_v37 = vpop.permute.xlu1 %150 }
 0x1f6   :  { %v1617_v38 = vmul.f32 %v151_v37, %v130_v30 }
 0x1f8   :  { %155 = vrot.lane.b32.xlu2 %v1617_v38, %s1505_s26 }
 0x252   :  { %v156_v39 = vpop.permute.xlu2 %155 }
 0x253   :  { %1333 = vmatmul.msk.f32.vlgmr.msra.gmra.mxu2 %vm88_vm1, %v156_v39 }
 0x2d6   :  { %v176_v40 = vpop.f32.mrf.mxu2 }
 0x2d7   :  { %v180_v41 = vrot.slane %v176_v40, 6 }
 0x2d9   :  { %v182_v42 = vadd.f32 %v180_v41, %v1607_v12 }
 0x2db   :  { %1384 = vtanh.f32 %v182_v42  ;;  %v1334_v44 = vmul.f32 -1.442695, %v182_v42 }
 0x2dd   :  { %1386 = vpow2.f32 %v1334_v44 }
 0x2e1   :  { %v1385_v43 = vpop.eup %1384 }
 0x2e2   :  { %208 = vrot.lane.b32.xlu2 %v1385_v43, %s1504_s23 }
 0x2e3   :  { %v1387_v45 = vpop.eup %1386 }
 0x2e4   :  { %v186_v46 = vadd.f32 1.0, %v1387_v45 }
 0x2e6   :  { %1388 = vrcp.f32 %v186_v46  ;;  %v198_v52 = vand.u32 2147483648, %v186_v46  ;;  %vm192_vm7 = vweird.f32 %v186_v46  ;;  %v196_v53 = vand.u32 2147483647, %v186_v46 }
 0x2e8   :  { %v199_v55 = vor.u32 1.1754944e-38, %v198_v52  ;;  %vm197_vm9 = vcmp.eq.f32.partialorder %v196_v53, 8.507059e+37 }
 0x2ec   :  { %v1389_v47 = vpop.eup %1388 }
 0x2ed   :  { %v188_v48 = vmul.f32 %v1389_v47, %v186_v46  ;;  %vm193_vm6 = vweird.f32 %v1389_v47 }
 0x2ee   :  { %vm194_vm8 = vmor %vm192_vm7, %vm193_vm6 }
 0x2ef   :  { %v189_v49 = vsub.f32 1.0, %v188_v48 }
 0x2f1   :  { %v190_v50 = vmul.f32 %v1389_v47, %v189_v49 }
 0x2f3   :  { %v191_v51 = vadd.f32 %v1389_v47, %v190_v50 }
 0x2f5   :  { %v195_v54 = vsel %vm194_vm8, %v1389_v47, %v191_v51 }
 0x2f6   :  { %v200_v57 = vsel %vm197_vm9, %v199_v55, %v195_v54 }
 0x2f7   :  { %v206_v60 = vmul.f32 %v204_v59, %v200_v57 }
 0x33c   :  { %v209_v56 = vpop.permute.xlu2 %208 }
 0x33d   :  { %v211_v58 = vmul.f32 %v209_v56, %v200_v57 }
 0x33f   :  { %213 = vrot.lane.b32.xlu0 %v211_v58, %s1505_s26 }
 0x3b1   :  { %v214_v61 = vpop.permute.xlu0 %213 }
 0x3b2   :  { %v216_v62 = vadd.f32 %v214_v61, %v206_v60 }
 0x3b4   :  { %1390 = vtanh.f32 %v216_v62  ;;  %v274_v25 = vrot.slane %v216_v62, 6 }
 0x3ba   :  { %v1391_v63 = vpop.eup %1390 }
 0x3bb   :  { %219 = vrot.lane.b32.xlu1 %v1391_v63, %s1504_s23 }
 0x42d   :  { %v220_v0 = vpop.permute.xlu1 %219 }
 0x42e   :  { %v222_v1 = vmul.f32 %v220_v0, %v200_v57 }
 0x430   :  { %v224_v2 = vrot.slane %v222_v1, 2  ;;  %v651_v32 = vsel %vm650_vm14, %v1617_v38, %v222_v1 }
 0x432   :  { %225 = vrot.lane.b32.xlu2 %v224_v2, %s1505_s26 }
 0x48c   :  { %v226_v3 = vpop.permute.xlu2 %225 }
 0x48d   :  { %1335 = vmatmul.msk.f32.vlgmr.msra.gmra.mxu3 %vm88_vm1, %v226_v3 }
 0x510   :  { %v246_v4 = vpop.f32.mrf.mxu3 }
 0x511   :  { %v250_v5 = vrot.slane %v246_v4, 4 }
 0x513   :  { %v252_v6 = vadd.f32 %v250_v5, %v1607_v12 }
 0x515   :  { %1392 = vtanh.f32 %v252_v6  ;;  %v1336_v8 = vmul.f32 -1.442695, %v252_v6 }
 0x517   :  { %1394 = vpow2.f32 %v1336_v8 }
 0x51b   :  { %v1393_v7 = vpop.eup %1392 }
 0x51c   :  { %278 = vrot.lane.b32.xlu0 %v1393_v7, %s1504_s23 }
 0x51d   :  { %v1395_v9 = vpop.eup %1394 }
 0x51e   :  { %v256_v11 = vadd.f32 1.0, %v1395_v9 }
 0x520   :  { %1396 = vrcp.f32 %v256_v11  ;;  %v268_v18 = vand.u32 2147483648, %v256_v11  ;;  %vm262_vm11 = vweird.f32 %v256_v11  ;;  %v266_v19 = vand.u32 2147483647, %v256_v11 }
 0x522   :  { %v269_v21 = vor.u32 1.1754944e-38, %v268_v18  ;;  %vm267_vm13 = vcmp.eq.f32.partialorder %v266_v19, 8.507059e+37 }
 0x526   :  { %v1397_v13 = vpop.eup %1396 }
 0x527   :  { %v258_v14 = vmul.f32 %v1397_v13, %v256_v11  ;;  %vm263_vm10 = vweird.f32 %v1397_v13 }
 0x528   :  { %vm264_vm12 = vmor %vm262_vm11, %vm263_vm10 }
 0x529   :  { %v259_v15 = vsub.f32 1.0, %v258_v14 }
 0x52b   :  { %v260_v16 = vmul.f32 %v1397_v13, %v259_v15 }
 0x52d   :  { %v261_v17 = vadd.f32 %v1397_v13, %v260_v16 }
 0x52f   :  { %v265_v20 = vsel %vm264_vm12, %v1397_v13, %v261_v17 }
 0x530   :  { %v270_v23 = vsel %vm267_vm13, %v269_v21, %v265_v20  ;;  %v662_v20 = vld [vmem:[%s1923_s4 + $0x18] sm:$0xff]  ;;  %v661_v21 = vld [vmem:[%s1923_s4 + $0x10] sm:$0xff] }
 0x531   :  { %v276_v26 = vmul.f32 %v274_v25, %v270_v23  ;;  %693 = vmatpush.msra.mxu2 %v662_v20 }
 0x533   :  { %694 = vmatpush.msra.mxu2 %v661_v21 }
 0x58e   :  { %v279_v22 = vpop.permute.xlu0 %278 }
 0x58f   :  { %v281_v24 = vmul.f32 %v279_v22, %v270_v23  ;;  %v660_v22 = vld [vmem:[%s1923_s4 + $0x8] sm:$0xff] }
 0x590   :  { %695 = vmatpush.msra.mxu2 %v660_v22 }
 0x591   :  { %283 = vrot.lane.b32.xlu1 %v281_v24, %s1505_s26 }
 0x603   :  { %v284_v27 = vpop.permute.xlu1 %283 }
 0x604   :  { %v286_v28 = vadd.f32 %v284_v27, %v276_v26 }
 0x606   :  { %1398 = vtanh.f32 %v286_v28  ;;  %v344_v54 = vrot.slane %v286_v28, 6 }
 0x60c   :  { %v1399_v29 = vpop.eup %1398 }
 0x60d   :  { %289 = vrot.lane.b32.xlu2 %v1399_v29, %s1504_s23 }
 0x667   :  { %v290_v30 = vpop.permute.xlu2 %289 }
 0x668   :  { %v292_v31 = vmul.f32 %v290_v30, %v270_v23  ;;  %v659_v23 = vld [vmem:[%s1923_s4] sm:$0xff] }
 0x669   :  { %696 = vmatpush.msra.mxu2 %v659_v23 }
 0x66a   :  { %v294_v33 = vrot.slane %v292_v31, 4  ;;  %v653_v34 = vsel %vm652_vm15, %v651_v32, %v292_v31  ;;  %v1672_v32 = vld [vmem:[%s1925_s5 + $0x18] sm:$0xff] }
 0x66b   :  { %719 = vmatpush.msra.mxu3 %v1672_v32  ;;  %786 = vmatpush.msra.mxu0 %v1672_v32 }
 0x66c   :  { %295 = vrot.lane.b32.xlu0 %v294_v33, %s1505_s26  ;;  %v1677_v33 = vld [vmem:[%s1925_s5 + $0x10] sm:$0xff] }
 0x66d   :  { %720 = vmatpush.msra.mxu3 %v1677_v33  ;;  %787 = vmatpush.msra.mxu0 %v1677_v33 }
 0x6de   :  { %v296_v35 = vpop.permute.xlu0 %295 }
 0x6df   :  { %1337 = vmatmul.msk.f32.vlgmr.msra.gmra.mxu1 %vm88_vm1, %v296_v35  ;;  %v1693_v35 = vld [vmem:[%s1925_s5] sm:$0xff] }
 0x6e0   :  { %856 = vmatpush.msra.mxu1 %v1672_v32 }
 0x6e2   :  { %857 = vmatpush.msra.mxu1 %v1677_v33 }
 0x75c   :  { %v316_v36 = vpop.f32.mrf.mxu1 }
 0x75d   :  { %v320_v37 = vrot.slane %v316_v36, 2 }
 0x75f   :  { %v322_v39 = vadd.f32 %v320_v37, %v1607_v12  ;;  %v1327_v37 = vld [vmem:[%s1921_s7 + $0x2] sm:$0x3] }
 0x761   :  { %1400 = vtanh.f32 %v322_v39  ;;  %v1338_v41 = vmul.f32 -1.442695, %v322_v39 }
 0x763   :  { %1402 = vpow2.f32 %v1338_v41  ;;  %v1721_v41 = vld [vmem:[%s1924_s6] ss:$0 sm:$0xff]  ;;  %s1506_s6 = smov 96  }
 0x767   :  { %v1401_v40 = vpop.eup %1400 }
 0x768   :  { %348 = vrot.lane.b32.xlu1 %v1401_v40, %s1504_s23 }
 0x769   :  { %v1403_v42 = vpop.eup %1402 }
 0x76a   :  { %v326_v38 = vadd.f32 1.0, %v1403_v42 }
 0x76c   :  { %1404 = vrcp.f32 %v326_v38  ;;  %v338_v48 = vand.u32 2147483648, %v326_v38  ;;  %vm332_vm2 = vweird.f32 %v326_v38  ;;  %v336_v49 = vand.u32 2147483647, %v326_v38 }
 0x76e   :  { %v339_v50 = vor.u32 1.1754944e-38, %v338_v48  ;;  %vm337_vm4 = vcmp.eq.f32.partialorder %v336_v49, 8.507059e+37  ;;  %v1328_v48 = vld [vmem:[%s1922_s8 + $0x2] sm:$0x3] }
 0x772   :  { %v1405_v43 = vpop.eup %1404 }
 0x773   :  { %v328_v44 = vmul.f32 %v1405_v43, %v326_v38  ;;  %vm333_vm0 = vweird.f32 %v1405_v43 }
 0x774   :  { %vm334_vm3 = vmor %vm332_vm2, %vm333_vm0 }
 0x775   :  { %v329_v45 = vsub.f32 1.0, %v328_v44 }
 0x777   :  { %v330_v46 = vmul.f32 %v1405_v43, %v329_v45 }
 0x779   :  { %v331_v47 = vadd.f32 %v1405_v43, %v330_v46 }
 0x77b   :  { %v335_v12 = vsel %vm334_vm3, %v1405_v43, %v331_v47 }
 0x77c   :  { %v340_v52 = vsel %vm337_vm4, %v339_v50, %v335_v12 }
 0x77d   :  { %v346_v55 = vmul.f32 %v344_v54, %v340_v52 }
 0x7da   :  { %v349_v51 = vpop.permute.xlu1 %348 }
 0x7db   :  { %v351_v53 = vmul.f32 %v349_v51, %v340_v52 }
 0x7dd   :  { %353 = vrot.lane.b32.xlu2 %v351_v53, %s1505_s26 }
 0x837   :  { %v354_v56 = vpop.permute.xlu2 %353 }
 0x838   :  { %v356_v57 = vadd.f32 %v354_v56, %v346_v55 }
 0x83a   :  { %1406 = vtanh.f32 %v356_v57  ;;  %v411_v24 = vrot.slane %v356_v57, 6 }
 0x840   :  { %v1407_v58 = vpop.eup %1406 }
 0x841   :  { %359 = vrot.lane.b32.xlu0 %v1407_v58, %s1504_s23 }
 0x8b3   :  { %v360_v59 = vpop.permute.xlu0 %359 }
 0x8b4   :  { %v362_v60 = vmul.f32 %v360_v59, %v340_v52 }
 0x8b6   :  { %v364_v61 = vrot.slane %v362_v60, 6  ;;  %v655_v62 = vsel %vm654_vm5, %v653_v34, %v362_v60  ;;  %v1684_v34 = vld [vmem:[%s1925_s5 + $0x8] sm:$0xff] }
 0x8b7   :  { %721 = vmatpush.msra.mxu3 %v1684_v34  ;;  %788 = vmatpush.msra.mxu0 %v1684_v34 }
 0x8b8   :  { %365 = vrot.lane.b32.xlu1 %v364_v61, %s1505_s26  ;;  %858 = vmatpush.msra.mxu1 %v1684_v34 }
 0x8b9   :  { %722 = vmatpush.msra.mxu3 %v1693_v35  ;;  %789 = vmatpush.msra.mxu0 %v1693_v35 }
 0x8ba   :  { %859 = vmatpush.msra.mxu1 %v1693_v35 }
 0x92a   :  { %v366_v63 = vpop.permute.xlu1 %365 }
 0x92b   :  { %1339 = vmatmul.msk.f32.vlgmr.msrb.gmra.mxu2 %vm88_vm1, %v366_v63 }
 0x92c   :  { %1132 = vmatpush.msrb.mxu2 %v1672_v32 }
 0x92e   :  { %1133 = vmatpush.msrb.mxu2 %v1677_v33 }
 0x930   :  { %1134 = vmatpush.msrb.mxu2 %v1684_v34 }
 0x932   :  { %1135 = vmatpush.msrb.mxu2 %v1693_v35 }
 0x9ae   :  { %v386_v0 = vpop.f32.mrf.mxu2 }
 0x9af   :  { %v389_v1 = vadd.f32 %v386_v0, %v1605_v10 }
 0x9b1   :  { %1408 = vtanh.f32 %v389_v1  ;;  %v1340_v3 = vmul.f32 -1.442695, %v389_v1 }
 0x9b3   :  { %1410 = vpow2.f32 %v1340_v3 }
 0x9b7   :  { %v1409_v2 = vpop.eup %1408 }
 0x9b8   :  { %415 = vrot.lane.b32.xlu2 %v1409_v2, %s1504_s23 }
 0x9b9   :  { %v1411_v4 = vpop.eup %1410 }
 0x9ba   :  { %v393_v5 = vadd.f32 1.0, %v1411_v4 }
 0x9bc   :  { %1412 = vrcp.f32 %v393_v5  ;;  %v405_v13 = vand.u32 2147483648, %v393_v5  ;;  %vm399_vm7 = vweird.f32 %v393_v5  ;;  %v403_v14 = vand.u32 2147483647, %v393_v5 }
 0x9be   :  { %v406_v16 = vor.u32 1.1754944e-38, %v405_v13  ;;  %vm404_vm9 = vcmp.eq.f32.partialorder %v403_v14, 8.507059e+37 }
 0x9c2   :  { %v1413_v6 = vpop.eup %1412 }
 0x9c3   :  { %v395_v7 = vmul.f32 %v1413_v6, %v393_v5  ;;  %vm400_vm6 = vweird.f32 %v1413_v6 }
 0x9c4   :  { %vm401_vm8 = vmor %vm399_vm7, %vm400_vm6 }
 0x9c5   :  { %v396_v8 = vsub.f32 1.0, %v395_v7 }
 0x9c7   :  { %v397_v9 = vmul.f32 %v1413_v6, %v396_v8 }
 0x9c9   :  { %v398_v11 = vadd.f32 %v1413_v6, %v397_v9 }
 0x9cb   :  { %v402_v15 = vsel %vm401_vm8, %v1413_v6, %v398_v11 }
 0x9cc   :  { %v407_v18 = vsel %vm404_vm9, %v406_v16, %v402_v15 }
 0x9cd   :  { %v413_v25 = vmul.f32 %v411_v24, %v407_v18 }
 0xa12   :  { %v416_v17 = vpop.permute.xlu2 %415 }
 0xa13   :  { %v418_v19 = vmul.f32 %v416_v17, %v407_v18 }
 0xa15   :  { %420 = vrot.lane.b32.xlu0 %v418_v19, %s1505_s26 }
 0xa1d   :  { %673 = vrot.lane.b32.xlu0 %v655_v62, %s1505_s26 }
 0xa87   :  { %v421_v26 = vpop.permute.xlu0 %420 }
 0xa88   :  { %v1660_v27 = vadd.f32 %v421_v26, %v413_v25 }
 0xa8a   :  { %1414 = vtanh.f32 %v1660_v27  ;;  %v480_v21 = vrot.slane %v1660_v27, 6 }
 0xa8f   :  { %v674_v28 = vpop.permute.xlu0 %673 }
 0xa90   :  { %v1415_v29 = vpop.eup %1414  ;;  %1347 = vmatmul.msk.f32.vlgmr.msra.gmra.mxu2 %vm88_vm1, %v674_v28 }
 0xa91   :  { %426 = vrot.lane.b32.xlu1 %v1415_v29, %s1504_s23 }
 0xb03   :  { %v427_v30 = vpop.permute.xlu1 %426 }
 0xb04   :  { %v1665_v31 = vmul.f32 %v427_v30, %v407_v18 }
 0xb06   :  { %431 = vrot.lane.b32.xlu2 %v1665_v31, %s1505_s26 }
 0xb13   :  { %v698_v38 = vpop.f32.mrf.mxu2 }
 0xb14   :  { %v1725_v43 = vadd.f32 %v1721_v41, %v698_v38 }
 0xb60   :  { %v432_v36 = vpop.permute.xlu2 %431 }
 0xb61   :  { %1341 = vmatmul.msk.f32.vlgmr.msrb.gmra.mxu3 %vm88_vm1, %v432_v36 }
 0xb62   :  { %926 = vmatpush.msrb.mxu3 %v1672_v32 }
 0xb64   :  { %927 = vmatpush.msrb.mxu3 %v1677_v33 }
 0xb66   :  { %928 = vmatpush.msrb.mxu3 %v1684_v34 }
 0xb68   :  { %929 = vmatpush.msrb.mxu3 %v1693_v35 }
 0xb69   :  { %1349 = vmatmul.msk.f32.vlgmr.msra.gmra.mxu3 %vm88_vm1, %v1327_v37 }
 0xb6a   :  { %1202 = vmatpush.msra.mxu3 %v1672_v32 }
 0xb6c   :  { %1203 = vmatpush.msra.mxu3 %v1677_v33 }
 0xb6e   :  { %1204 = vmatpush.msra.mxu3 %v1684_v34 }
 0xb70   :  { %1205 = vmatpush.msra.mxu3 %v1693_v35 }
 0xbe4   :  { %v452_v39 = vpop.f32.mrf.mxu3 }
 0xbe5   :  { %v456_v40 = vrot.slane %v452_v39, 6 }
 0xbe7   :  { %v458_v42 = vadd.f32 %v456_v40, %v1605_v10 }
 0xbe9   :  { %1416 = vtanh.f32 %v458_v42  ;;  %v1342_v51 = vmul.f32 -1.442695, %v458_v42 }
 0xbec   :  { %v724_v44 = vpop.f32.mrf.mxu3 }
 0xbed   :  { %v727_v45 = vadd.f32 %v724_v44, %v1725_v43 }
 0xbef   :  { %v1417_v46 = vpop.eup %1416  ;;  %1418 = vtanh.f32 %v727_v45  ;;  %v1350_v49 = vmul.f32 -1.442695, %v727_v45 }
 0xbf0   :  { %484 = vrot.lane.b32.xlu1 %v1417_v46, %s1504_s23 }
 0xbf1   :  { %1420 = vpow2.f32 %v1350_v49 }
 0xbf5   :  { %v1419_v47 = vpop.eup %1418 }
 0xbf6   :  { %754 = vrot.lane.b32.xlu2 %v1419_v47, %s1504_s23 }
 0xbf7   :  { %v1421_v12 = vpop.eup %1420 }
 0xbf8   :  { %749 = vrot.lane.b32.xlu1 %v1328_v48, %s1505_s26  ;;  %v731_v50 = vadd.f32 1.0, %v1421_v12 }
 0xbfa   :  { %1422 = vrcp.f32 %v731_v50  ;;  %v743_v59 = vand.u32 2147483648, %v731_v50  ;;  %vm737_vm11 = vweird.f32 %v731_v50  ;;  %v741_v60 = vand.u32 2147483647, %v731_v50 }
 0xbfb   :  { %1424 = vpow2.f32 %v1342_v51 }
 0xbfc   :  { %v744_v63 = vor.u32 1.1754944e-38, %v743_v59  ;;  %vm742_vm13 = vcmp.eq.f32.partialorder %v741_v60, 8.507059e+37 }
 0xc00   :  { %v1423_v52 = vpop.eup %1422 }
 0xc01   :  { %v733_v53 = vmul.f32 %v1423_v52, %v731_v50  ;;  %v1425_v54 = vpop.eup %1424  ;;  %vm738_vm10 = vweird.f32 %v1423_v52 }
 0xc02   :  { %v462_v56 = vadd.f32 1.0, %v1425_v54  ;;  %vm739_vm12 = vmor %vm737_vm11, %vm738_vm10 }
 0xc03   :  { %v734_v55 = vsub.f32 1.0, %v733_v53 }
 0xc04   :  { %1426 = vrcp.f32 %v462_v56  ;;  %v474_v7 = vand.u32 2147483648, %v462_v56  ;;  %vm468_vm2 = vweird.f32 %v462_v56  ;;  %v472_v8 = vand.u32 2147483647, %v462_v56 }
 0xc05   :  { %v735_v57 = vmul.f32 %v1423_v52, %v734_v55 }
 0xc06   :  { %v475_v11 = vor.u32 1.1754944e-38, %v474_v7  ;;  %vm473_vm4 = vcmp.eq.f32.partialorder %v472_v8, 8.507059e+37 }
 0xc07   :  { %v736_v58 = vadd.f32 %v1423_v52, %v735_v57 }
 0xc09   :  { %v740_v62 = vsel %vm739_vm12, %v1423_v52, %v736_v58 }
 0xc0a   :  { %v1427_v61 = vpop.eup %1426  ;;  %v745_v2 = vsel %vm742_vm13, %v744_v63, %v740_v62 }
 0xc0b   :  { %v464_v0 = vmul.f32 %v1427_v61, %v462_v56  ;;  %vm469_vm0 = vweird.f32 %v1427_v61 }
 0xc0c   :  { %vm470_vm3 = vmor %vm468_vm2, %vm469_vm0 }
 0xc0d   :  { %v465_v4 = vsub.f32 1.0, %v464_v0 }
 0xc0f   :  { %v466_v5 = vmul.f32 %v1427_v61, %v465_v4 }
 0xc11   :  { %v467_v6 = vadd.f32 %v1427_v61, %v466_v5 }
 0xc13   :  { %v471_v9 = vsel %vm470_vm3, %v1427_v61, %v467_v6 }
 0xc14   :  { %v476_v14 = vsel %vm473_vm4, %v475_v11, %v471_v9 }
 0xc15   :  { %v482_v22 = vmul.f32 %v480_v21, %v476_v14 }
 0xc50   :  { %v755_v1 = vpop.permute.xlu2 %754 }
 0xc51   :  { %v757_v3 = vmul.f32 %v755_v1, %v745_v2 }
 0xc53   :  { %759 = vrot.lane.b32.xlu2 %v757_v3, %s1505_s26 }
 0xc62   :  { %v485_v13 = vpop.permute.xlu1 %484 }
 0xc63   :  { %v487_v15 = vmul.f32 %v485_v13, %v476_v14 }
 0xc65   :  { %489 = vrot.lane.b32.xlu0 %v487_v15, %s1505_s26 }
 0xc6a   :  { %v750_v16 = vpop.permute.xlu1 %749 }
 0xc6b   :  { %v752_v17 = vmul.f32 %v750_v16, %v745_v2 }
 0xcad   :  { %v760_v18 = vpop.permute.xlu2 %759 }
 0xcae   :  { %v1736_v19 = vadd.f32 %v760_v18, %v752_v17 }
 0xcb0   :  { %1428 = vtanh.f32 %v1736_v19  ;;  %v819_v15 = vrot.slane %v1736_v19, 6 }
 0xcb6   :  { %v1429_v20 = vpop.eup %1428 }
 0xcb7   :  { %765 = vrot.lane.b32.xlu1 %v1429_v20, %s1504_s23 }
 0xcd7   :  { %v490_v23 = vpop.permute.xlu0 %489 }
 0xcd8   :  { %v1741_v24 = vadd.f32 %v490_v23, %v482_v22 }
 0xcda   :  { %1430 = vtanh.f32 %v1741_v24  ;;  %v550_v21 = vrot.slane %v1741_v24, 6 }
 0xce0   :  { %v1431_v25 = vpop.eup %1430 }
 0xce1   :  { %495 = vrot.lane.b32.xlu0 %v1431_v25, %s1504_s23 }
 0xd29   :  { %v766_v26 = vpop.permute.xlu1 %765 }
 0xd2a   :  { %v1745_v28 = vmul.f32 %v766_v26, %v745_v2 }
 0xd2c   :  { %770 = vrot.lane.b32.xlu0 %v1745_v28, %s1505_s26 }
 0xd53   :  { %v496_v29 = vpop.permute.xlu0 %495 }
 0xd54   :  { %v1749_v30 = vmul.f32 %v496_v29, %v476_v14 }
 0xd56   :  { %v500_v27 = vrot.slane %v1749_v30, 2 }
 0xd58   :  { %501 = vrot.lane.b32.xlu2 %v500_v27, %s1505_s26  ;;  %v656_v27 = vsel %vm650_vm14, %v1665_v31, %v1749_v30 }
 0xd9e   :  { %v771_v37 = vpop.permute.xlu0 %770 }
 0xdb2   :  { %v502_v36 = vpop.permute.xlu2 %501 }
 0xdb3   :  { %1343 = vmatmul.msk.f32.vlgmr.msrb.gmra.mxu0 %vm88_vm1, %v502_v36 }
 0xdb4   :  { %996 = vmatpush.msrb.mxu0 %v1672_v32 }
 0xdb6   :  { %997 = vmatpush.msrb.mxu0 %v1677_v33 }
 0xdb8   :  { %998 = vmatpush.msrb.mxu0 %v1684_v34 }
 0xdba   :  { %999 = vmatpush.msrb.mxu0 %v1693_v35 }
 0xdbb   :  { %1351 = vmatmul.msk.f32.vlgmr.msra.gmra.mxu0 %vm88_vm1, %v771_v37 }
 0xe30   :  { %v522_v39 = vpop.f32.mrf.mxu0 }
 0xe31   :  { %v526_v40 = vrot.slane %v522_v39, 4 }
 0xe33   :  { %v528_v42 = vadd.f32 %v526_v40, %v1605_v10 }
 0xe35   :  { %1432 = vtanh.f32 %v528_v42  ;;  %v1344_v50 = vmul.f32 -1.442695, %v528_v42 }
 0xe38   :  { %v791_v38 = vpop.f32.mrf.mxu0 }
 0xe39   :  { %v795_v44 = vrot.slane %v791_v38, 6 }
 0xe3b   :  { %v1433_v45 = vpop.eup %1432  ;;  %v797_v46 = vadd.f32 %v795_v44, %v1725_v43 }
 0xe3c   :  { %554 = vrot.lane.b32.xlu1 %v1433_v45, %s1504_s23 }
 0xe3d   :  { %1434 = vtanh.f32 %v797_v46  ;;  %v1352_v48 = vmul.f32 -1.442695, %v797_v46 }
 0xe3f   :  { %1436 = vpow2.f32 %v1352_v48 }
 0xe43   :  { %v1435_v47 = vpop.eup %1434 }
 0xe44   :  { %823 = vrot.lane.b32.xlu2 %v1435_v47, %s1504_s23 }
 0xe45   :  { %v1437_v49 = vpop.eup %1436 }
 0xe46   :  { %v801_v12 = vadd.f32 1.0, %v1437_v49 }
 0xe48   :  { %1438 = vrcp.f32 %v801_v12  ;;  %v813_v59 = vand.u32 2147483648, %v801_v12  ;;  %vm807_vm7 = vweird.f32 %v801_v12  ;;  %v811_v60 = vand.u32 2147483647, %v801_v12 }
 0xe49   :  { %1440 = vpow2.f32 %v1344_v50 }
 0xe4a   :  { %v814_v63 = vor.u32 1.1754944e-38, %v813_v59  ;;  %vm812_vm9 = vcmp.eq.f32.partialorder %v811_v60, 8.507059e+37 }
 0xe4e   :  { %v1439_v51 = vpop.eup %1438 }
 0xe4f   :  { %v1441_v52 = vpop.eup %1440  ;;  %v803_v53 = vmul.f32 %v1439_v51, %v801_v12  ;;  %vm808_vm6 = vweird.f32 %v1439_v51 }
 0xe50   :  { %v532_v54 = vadd.f32 1.0, %v1441_v52  ;;  %vm809_vm8 = vmor %vm807_vm7, %vm808_vm6 }
 0xe51   :  { %v804_v55 = vsub.f32 1.0, %v803_v53 }
 0xe52   :  { %1442 = vrcp.f32 %v532_v54  ;;  %v544_v6 = vand.u32 2147483648, %v532_v54  ;;  %vm538_vm11 = vweird.f32 %v532_v54  ;;  %v542_v7 = vand.u32 2147483647, %v532_v54 }
 0xe53   :  { %v805_v56 = vmul.f32 %v1439_v51, %v804_v55 }
 0xe54   :  { %v545_v9 = vor.u32 1.1754944e-38, %v544_v6  ;;  %vm543_vm13 = vcmp.eq.f32.partialorder %v542_v7, 8.507059e+37 }
 0xe55   :  { %v806_v57 = vadd.f32 %v1439_v51, %v805_v56 }
 0xe57   :  { %v810_v61 = vsel %vm809_vm8, %v1439_v51, %v806_v57 }
 0xe58   :  { %v1443_v58 = vpop.eup %1442  ;;  %v815_v1 = vsel %vm812_vm9, %v814_v63, %v810_v61 }
 0xe59   :  { %v534_v62 = vmul.f32 %v1443_v58, %v532_v54  ;;  %vm539_vm10 = vweird.f32 %v1443_v58  ;;  %v821_v16 = vmul.f32 %v819_v15, %v815_v1 }
 0xe5a   :  { %vm540_vm12 = vmor %vm538_vm11, %vm539_vm10 }
 0xe5b   :  { %v535_v3 = vsub.f32 1.0, %v534_v62 }
 0xe5d   :  { %v536_v4 = vmul.f32 %v1443_v58, %v535_v3 }
 0xe5f   :  { %v537_v5 = vadd.f32 %v1443_v58, %v536_v4 }
 0xe61   :  { %v541_v8 = vsel %vm540_vm12, %v1443_v58, %v537_v5 }
 0xe62   :  { %v546_v13 = vsel %vm543_vm13, %v545_v9, %v541_v8 }
 0xe63   :  { %v552_v22 = vmul.f32 %v550_v21, %v546_v13 }
 0xe9e   :  { %v824_v0 = vpop.permute.xlu2 %823 }
 0xe9f   :  { %v826_v2 = vmul.f32 %v824_v0, %v815_v1 }
 0xea1   :  { %828 = vrot.lane.b32.xlu1 %v826_v2, %s1505_s26 }
 0xeae   :  { %v555_v11 = vpop.permute.xlu1 %554 }
 0xeaf   :  { %v557_v14 = vmul.f32 %v555_v11, %v546_v13 }
 0xeb1   :  { %559 = vrot.lane.b32.xlu0 %v557_v14, %s1505_s26 }
 0xf13   :  { %v829_v17 = vpop.permute.xlu1 %828 }
 0xf14   :  { %v1766_v18 = vadd.f32 %v829_v17, %v821_v16 }
 0xf16   :  { %1444 = vtanh.f32 %v1766_v18  ;;  %v889_v60 = vrot.slane %v1766_v18, 6 }
 0xf1c   :  { %v1445_v20 = vpop.eup %1444 }
 0xf1d   :  { %834 = vrot.lane.b32.xlu0 %v1445_v20, %s1504_s23 }
 0xf23   :  { %v560_v23 = vpop.permute.xlu0 %559 }
 0xf24   :  { %v1771_v25 = vadd.f32 %v560_v23, %v552_v22 }
 0xf26   :  { %1446 = vtanh.f32 %v1771_v25 }
 0xf2c   :  { %v1447_v26 = vpop.eup %1446 }
 0xf2d   :  { %565 = vrot.lane.b32.xlu2 %v1447_v26, %s1504_s23 }
 0xf87   :  { %v566_v19 = vpop.permute.xlu2 %565 }
 0xf88   :  { %v568_v29 = vmul.f32 %v566_v19, %v546_v13 }
 0xf8a   :  { %v570_v36 = vrot.slane %v568_v29, 4  ;;  %v1779_v37 = vsel %vm652_vm15, %v656_v27, %v568_v29  ;;  %v620_v29 = vrot.slane %v1771_v25, 6 }
 0xf8c   :  { %571 = vrot.lane.b32.xlu1 %v570_v36, %s1505_s26 }
 0xf8f   :  { %v835_v24 = vpop.permute.xlu0 %834 }
 0xf90   :  { %v1782_v39 = vmul.f32 %v835_v24, %v815_v1 }
 0xf92   :  { %v839_v40 = vrot.slane %v1782_v39, 2  ;;  %v1266_v9 = vsel %vm650_vm14, %v1745_v28, %v1782_v39 }
 0xf94   :  { %840 = vrot.lane.b32.xlu2 %v839_v40, %s1505_s26 }
 0xfee   :  { %v841_v31 = vpop.permute.xlu2 %840 }
 0xffe   :  { %v572_v42 = vpop.permute.xlu1 %571 }
 0xfff   :  { %1345 = vmatmul.msk.f32.vlgmr.msrb.gmra.mxu1 %vm88_vm1, %v572_v42 }
0x1000   :  { %1062 = vmatpush.msrb.mxu1 %v1672_v32 }
0x1002   :  { %1063 = vmatpush.msrb.mxu1 %v1677_v33 }
0x1004   :  { %1064 = vmatpush.msrb.mxu1 %v1684_v34 }
0x1006   :  { %1065 = vmatpush.msrb.mxu1 %v1693_v35 }
0x1007   :  { %1353 = vmatmul.msk.f32.vlgmr.msra.gmra.mxu1 %vm88_vm1, %v841_v31 }
0x107c   :  { %v592_v30 = vpop.f32.mrf.mxu1 }
0x107d   :  { %v596_v52 = vrot.slane %v592_v30, 2 }
0x107f   :  { %v598_v55 = vadd.f32 %v596_v52, %v1605_v10 }
0x1081   :  { %v1346_v10 = vmul.f32 -1.442695, %v598_v55 }
0x1084   :  { %v861_v38 = vpop.f32.mrf.mxu1 }
0x1085   :  { %v865_v44 = vrot.slane %v861_v38, 4 }
0x1087   :  { %v867_v45 = vadd.f32 %v865_v44, %v1725_v43 }
0x1089   :  { %1448 = vtanh.f32 %v867_v45  ;;  %v1354_v47 = vmul.f32 -1.442695, %v867_v45 }
0x108b   :  { %1450 = vpow2.f32 %v1354_v47 }
0x108f   :  { %v1449_v46 = vpop.eup %1448 }
0x1090   :  { %893 = vrot.lane.b32.xlu0 %v1449_v46, %s1504_s23 }
0x1091   :  { %v1451_v32 = vpop.eup %1450 }
0x1092   :  { %v871_v33 = vadd.f32 1.0, %v1451_v32 }
0x1094   :  { %1452 = vrcp.f32 %v871_v33  ;;  %v883_v50 = vand.u32 2147483648, %v871_v33  ;;  %vm877_vm2 = vweird.f32 %v871_v33  ;;  %v881_v51 = vand.u32 2147483647, %v871_v33 }
0x1095   :  { %1454 = vtanh.f32 %v598_v55 }
0x1096   :  { %v884_v54 = vor.u32 1.1754944e-38, %v883_v50  ;;  %vm882_vm4 = vcmp.eq.f32.partialorder %v881_v51, 8.507059e+37 }
0x109a   :  { %v1453_v34 = vpop.eup %1452 }
0x109b   :  { %v873_v48 = vmul.f32 %v1453_v34, %v871_v33  ;;  %vm878_vm0 = vweird.f32 %v1453_v34  ;;  %v1455_v59 = vpop.eup %1454 }
0x109c   :  { %vm879_vm3 = vmor %vm877_vm2, %vm878_vm0 }
0x109d   :  { %v874_v49 = vsub.f32 1.0, %v873_v48 }
0x109f   :  { %v875_v35 = vmul.f32 %v1453_v34, %v874_v49 }
0x10a1   :  { %v876_v12 = vadd.f32 %v1453_v34, %v875_v35 }
0x10a3   :  { %v880_v53 = vsel %vm879_vm3, %v1453_v34, %v876_v12 }
0x10a4   :  { %v885_v57 = vsel %vm882_vm4, %v884_v54, %v880_v53 }
0x10a5   :  { %v891_v61 = vmul.f32 %v889_v60, %v885_v57 }
0x1102   :  { %v894_v56 = vpop.permute.xlu0 %893 }
0x1103   :  { %v896_v58 = vmul.f32 %v894_v56, %v885_v57 }
0x1105   :  { %898 = vrot.lane.b32.xlu1 %v896_v58, %s1505_s26 }
0x110d   :  { %624 = vrot.lane.b32.xlu1 %v1455_v59, %s1504_s23 }
0x1177   :  { %v899_v62 = vpop.permute.xlu1 %898 }
0x1178   :  { %v1798_v63 = vadd.f32 %v899_v62, %v891_v61 }
0x117a   :  { %1456 = vtanh.f32 %v1798_v63  ;;  %v959_v51 = vrot.slane %v1798_v63, 6 }
0x117b   :  { %1458 = vpow2.f32 %v1346_v10 }
0x117f   :  { %v625_v20 = vpop.permute.xlu1 %624 }
0x1180   :  { %v1457_v0 = vpop.eup %1456 }
0x1181   :  { %904 = vrot.lane.b32.xlu2 %v1457_v0, %s1504_s23  ;;  %v1459_v1 = vpop.eup %1458 }
0x1182   :  { %v602_v2 = vadd.f32 1.0, %v1459_v1 }
0x1184   :  { %1460 = vrcp.f32 %v602_v2  ;;  %v614_v15 = vand.u32 2147483648, %v602_v2  ;;  %vm608_vm7 = vweird.f32 %v602_v2  ;;  %v612_v16 = vand.u32 2147483647, %v602_v2 }
0x1186   :  { %v615_v18 = vor.u32 1.1754944e-38, %v614_v15  ;;  %vm613_vm9 = vcmp.eq.f32.partialorder %v612_v16, 8.507059e+37 }
0x118a   :  { %v1461_v3 = vpop.eup %1460 }
0x118b   :  { %v604_v4 = vmul.f32 %v1461_v3, %v602_v2  ;;  %vm609_vm6 = vweird.f32 %v1461_v3 }
0x118c   :  { %vm610_vm8 = vmor %vm608_vm7, %vm609_vm6 }
0x118d   :  { %v605_v5 = vsub.f32 1.0, %v604_v4 }
0x118f   :  { %v606_v6 = vmul.f32 %v1461_v3, %v605_v5 }
0x1191   :  { %v607_v11 = vadd.f32 %v1461_v3, %v606_v6 }
0x1193   :  { %v611_v17 = vsel %vm610_vm8, %v1461_v3, %v607_v11 }
0x1194   :  { %v616_v21 = vsel %vm613_vm9, %v615_v18, %v611_v17 }
0x1195   :  { %v627_v22 = vmul.f32 %v625_v20, %v616_v21  ;;  %v622_v36 = vmul.f32 %v620_v29, %v616_v21 }
0x11db   :  { %v905_v7 = vpop.permute.xlu2 %904 }
0x11dc   :  { %v907_v8 = vmul.f32 %v905_v7, %v885_v57 }
0x11de   :  { %v909_v13 = vrot.slane %v907_v8, 4  ;;  %v1806_v14 = vsel %vm652_vm15, %v1266_v9, %v907_v8 }
0x11e0   :  { %910 = vrot.lane.b32.xlu0 %v909_v13, %s1505_s26 }
0x11e8   :  { %629 = vrot.lane.b32.xlu0 %v627_v22, %s1505_s26 }
0x1252   :  { %v911_v28 = vpop.permute.xlu0 %910 }
0x1253   :  { %1355 = vmatmul.msk.f32.vlgmr.msrb.gmra.mxu3 %vm88_vm1, %v911_v28 }
0x125a   :  { %v630_v27 = vpop.permute.xlu0 %629 }
0x125b   :  { %v1813_v24 = vadd.f32 %v630_v27, %v622_v36 }
0x12d6   :  { %v931_v23 = vpop.f32.mrf.mxu3 }
0x12d7   :  { %v935_v26 = vrot.slane %v931_v23, 2 }
0x12d9   :  { %v937_v19 = vadd.f32 %v935_v26, %v1725_v43 }
0x12db   :  { %1462 = vtanh.f32 %v937_v19  ;;  %v1356_v42 = vmul.f32 -1.442695, %v937_v19 }
0x12dc   :  { %1464 = vtanh.f32 %v1813_v24 }
0x12dd   :  { %1466 = vpow2.f32 %v1356_v42 }
0x12e1   :  { %v1463_v39 = vpop.eup %1462 }
0x12e2   :  { %963 = vrot.lane.b32.xlu2 %v1463_v39, %s1504_s23  ;;  %v1465_v40 = vpop.eup %1464 }
0x12e3   :  { %v1467_v31 = vpop.eup %1466 }
0x12e4   :  { %v941_v30 = vadd.f32 1.0, %v1467_v31 }
0x12e6   :  { %1468 = vrcp.f32 %v941_v30  ;;  %v953_v46 = vand.u32 2147483648, %v941_v30  ;;  %vm947_vm11 = vweird.f32 %v941_v30  ;;  %v951_v47 = vand.u32 2147483647, %v941_v30 }
0x12e8   :  { %v954_v33 = vor.u32 1.1754944e-38, %v953_v46  ;;  %vm952_vm13 = vcmp.eq.f32.partialorder %v951_v47, 8.507059e+37 }
0x12ea   :  { %635 = vrot.lane.b32.xlu2 %v1465_v40, %s1504_s23 }
0x12ec   :  { %v1469_v43 = vpop.eup %1468 }
0x12ed   :  { %v943_v25 = vmul.f32 %v1469_v43, %v941_v30  ;;  %vm948_vm10 = vweird.f32 %v1469_v43 }
0x12ee   :  { %vm949_vm12 = vmor %vm947_vm11, %vm948_vm10 }
0x12ef   :  { %v944_v38 = vsub.f32 1.0, %v943_v25 }
0x12f1   :  { %v945_v44 = vmul.f32 %v1469_v43, %v944_v38 }
0x12f3   :  { %v946_v45 = vadd.f32 %v1469_v43, %v945_v44 }
0x12f5   :  { %v950_v32 = vsel %vm949_vm12, %v1469_v43, %v946_v45 }
0x12f6   :  { %v955_v48 = vsel %vm952_vm13, %v954_v33, %v950_v32 }
0x12f7   :  { %v961_v52 = vmul.f32 %v959_v51, %v955_v48 }
0x133c   :  { %v964_v34 = vpop.permute.xlu2 %963 }
0x133d   :  { %v966_v49 = vmul.f32 %v964_v34, %v955_v48 }
0x133f   :  { %968 = vrot.lane.b32.xlu1 %v966_v49, %s1505_s26 }
0x1344   :  { %v636_v35 = vpop.permute.xlu2 %635 }
0x1345   :  { %v1819_v12 = vmul.f32 %v636_v35, %v616_v21 }
0x1347   :  { %v658_v50 = vsel %vm654_vm5, %v1779_v37, %v1819_v12 }
0x1348   :  { %675 = vrot.lane.b32.xlu1 %v658_v50, %s1505_s26 }
0x13b1   :  { %v969_v53 = vpop.permute.xlu1 %968 }
0x13b2   :  { %v971_v54 = vadd.f32 %v969_v53, %v961_v52 }
0x13b4   :  { %1470 = vtanh.f32 %v971_v54  ;;  %v1026_v17 = vrot.slane %v971_v54, 6 }
0x13ba   :  { %v1471_v55 = vpop.eup %1470  ;;  %v676_v56 = vpop.permute.xlu1 %675 }
0x13bb   :  { %974 = vrot.lane.b32.xlu0 %v1471_v55, %s1504_s23  ;;  %1348 = vmatmul.msk.f32.gmra.mxu2 %vm88_vm1, %v676_v56 }
0x142d   :  { %v975_v57 = vpop.permute.xlu0 %974 }
0x142e   :  { %v977_v58 = vmul.f32 %v975_v57, %v955_v48 }
0x1430   :  { %v979_v59 = vrot.slane %v977_v58, 6  ;;  %v1830_v37 = vsel %vm654_vm5, %v1806_v14, %v977_v58 }
0x1432   :  { %980 = vrot.lane.b32.xlu2 %v979_v59, %s1505_s26 }
0x143e   :  { %v701_v61 = vpop.f32.mrf.mxu2 }
0x143f   :  { %v1835_v62 = vadd.f32 %v1721_v41, %v701_v61 }
0x148c   :  { %v981_v60 = vpop.permute.xlu2 %980 }
0x148d   :  { %1357 = vmatmul.msk.f32.vlgmr.msrb.gmra.mxu0 %vm88_vm1, %v981_v60 }
0x150a   :  { %v1001_v63 = vpop.f32.mrf.mxu0 }
0x150b   :  { %v1004_v0 = vadd.f32 %v1001_v63, %v1835_v62 }
0x150d   :  { %1472 = vtanh.f32 %v1004_v0  ;;  %v1358_v1 = vmul.f32 -1.442695, %v1004_v0 }
0x150f   :  { %1474 = vpow2.f32 %v1358_v1 }
0x1513   :  { %v1473_v10 = vpop.eup %1472 }
0x1514   :  { %1030 = vrot.lane.b32.xlu0 %v1473_v10, %s1504_s23 }
0x1515   :  { %v1475_v2 = vpop.eup %1474 }
0x1516   :  { %v1008_v3 = vadd.f32 1.0, %v1475_v2 }
0x1518   :  { %1476 = vrcp.f32 %v1008_v3  ;;  %v1020_v41 = vand.u32 2147483648, %v1008_v3  ;;  %vm1014_vm2 = vweird.f32 %v1008_v3  ;;  %v1018_v9 = vand.u32 2147483647, %v1008_v3 }
0x151a   :  { %v1021_v13 = vor.u32 1.1754944e-38, %v1020_v41  ;;  %vm1019_vm4 = vcmp.eq.f32.partialorder %v1018_v9, 8.507059e+37 }
0x151e   :  { %v1477_v4 = vpop.eup %1476 }
0x151f   :  { %v1010_v5 = vmul.f32 %v1477_v4, %v1008_v3  ;;  %vm1015_vm0 = vweird.f32 %v1477_v4 }
0x1520   :  { %vm1016_vm3 = vmor %vm1014_vm2, %vm1015_vm0 }
0x1521   :  { %v1011_v6 = vsub.f32 1.0, %v1010_v5 }
0x1523   :  { %v1012_v7 = vmul.f32 %v1477_v4, %v1011_v6 }
0x1525   :  { %v1013_v8 = vadd.f32 %v1477_v4, %v1012_v7 }
0x1527   :  { %v1017_v11 = vsel %vm1016_vm3, %v1477_v4, %v1013_v8  ;;  %vm643_vm3 = vcmask 261126  }
0x1528   :  { %v1022_v15 = vsel %vm1019_vm4, %v1021_v13, %v1017_v11 }
0x1529   :  { %v1028_v18 = vmul.f32 %v1026_v17, %v1022_v15 }
0x1586   :  { %v1031_v14 = vpop.permute.xlu0 %1030 }
0x1587   :  { %v1033_v16 = vmul.f32 %v1031_v14, %v1022_v15 }
0x1589   :  { %1035 = vrot.lane.b32.xlu1 %v1033_v16, %s1505_s26 }
0x15fb   :  { %v1036_v20 = vpop.permute.xlu1 %1035 }
0x15fc   :  { %v1038_v21 = vadd.f32 %v1036_v20, %v1028_v18 }
0x15fe   :  { %1478 = vtanh.f32 %v1038_v21  ;;  %v1095_v48 = vrot.slane %v1038_v21, 6 }
0x1604   :  { %v1479_v22 = vpop.eup %1478 }
0x1605   :  { %1041 = vrot.lane.b32.xlu2 %v1479_v22, %s1504_s23 }
0x165f   :  { %v1042_v28 = vpop.permute.xlu2 %1041 }
0x1660   :  { %v1841_v23 = vmul.f32 %v1042_v28, %v1022_v15 }
0x1662   :  { %1046 = vrot.lane.b32.xlu0 %v1841_v23, %s1505_s26 }
0x16d4   :  { %v1047_v26 = vpop.permute.xlu0 %1046 }
0x16d5   :  { %1359 = vmatmul.msk.f32.vlgmr.msrb.gmra.mxu1 %vm88_vm1, %v1047_v26 }
0x1752   :  { %v1067_v19 = vpop.f32.mrf.mxu1 }
0x1753   :  { %v1071_v29 = vrot.slane %v1067_v19, 6 }
0x1755   :  { %v1073_v27 = vadd.f32 %v1071_v29, %v1835_v62 }
0x1757   :  { %1480 = vtanh.f32 %v1073_v27  ;;  %v1360_v39 = vmul.f32 -1.442695, %v1073_v27 }
0x1759   :  { %1482 = vpow2.f32 %v1360_v39 }
0x175d   :  { %v1481_v36 = vpop.eup %1480 }
0x175e   :  { %1099 = vrot.lane.b32.xlu1 %v1481_v36, %s1504_s23 }
0x175f   :  { %v1483_v40 = vpop.eup %1482 }
0x1760   :  { %v1077_v42 = vadd.f32 1.0, %v1483_v40  ;;  %v1275_v40 = vld [vmem:[%s1926_s9 + $0x18] sm:$0xff] }
0x1761   :  { %1302 = vmatpush.msra.mxu0 %v1275_v40 }
0x1762   :  { %1484 = vrcp.f32 %v1077_v42  ;;  %v1089_v44 = vand.u32 2147483648, %v1077_v42  ;;  %vm1083_vm7 = vweird.f32 %v1077_v42  ;;  %v1087_v45 = vand.u32 2147483647, %v1077_v42 }
0x1764   :  { %v1090_v47 = vor.u32 1.1754944e-38, %v1089_v44  ;;  %vm1088_vm9 = vcmp.eq.f32.partialorder %v1087_v45, 8.507059e+37 }
0x1768   :  { %v1485_v31 = vpop.eup %1484 }
0x1769   :  { %v1079_v30 = vmul.f32 %v1485_v31, %v1077_v42  ;;  %vm1084_vm6 = vweird.f32 %v1485_v31 }
0x176a   :  { %vm1085_vm8 = vmor %vm1083_vm7, %vm1084_vm6 }
0x176b   :  { %v1080_v43 = vsub.f32 1.0, %v1079_v30 }
0x176d   :  { %v1081_v25 = vmul.f32 %v1485_v31, %v1080_v43 }
0x176f   :  { %v1082_v38 = vadd.f32 %v1485_v31, %v1081_v25 }
0x1771   :  { %v1086_v46 = vsel %vm1085_vm8, %v1485_v31, %v1082_v38 }
0x1772   :  { %v1091_v33 = vsel %vm1088_vm9, %v1090_v47, %v1086_v46 }
0x1773   :  { %v1097_v49 = vmul.f32 %v1095_v48, %v1091_v33 }
0x17d0   :  { %v1100_v32 = vpop.permute.xlu1 %1099 }
0x17d1   :  { %v1102_v34 = vmul.f32 %v1100_v32, %v1091_v33 }
0x17d3   :  { %1104 = vrot.lane.b32.xlu2 %v1102_v34, %s1505_s26 }
0x182d   :  { %v1105_v35 = vpop.permute.xlu2 %1104 }
0x182e   :  { %v1107_v50 = vadd.f32 %v1105_v35, %v1097_v49 }
0x1830   :  { %1486 = vtanh.f32 %v1107_v50  ;;  %v1165_v11 = vrot.slane %v1107_v50, 6 }
0x1836   :  { %v1487_v51 = vpop.eup %1486 }
0x1837   :  { %1110 = vrot.lane.b32.xlu0 %v1487_v51, %s1504_s23 }
0x18a9   :  { %v1111_v52 = vpop.permute.xlu0 %1110 }
0x18aa   :  { %v1113_v53 = vmul.f32 %v1111_v52, %v1091_v33 }
0x18ac   :  { %v1115_v54 = vrot.slane %v1113_v53, 2  ;;  %v1269_v20 = vsel %vm650_vm14, %v1841_v23, %v1113_v53  ;;  %v1375_v53 = vld [vmem:[%s1927_s10] ss:$0 sm:$0xff] }
0x18ae   :  { %1116 = vrot.lane.b32.xlu1 %v1115_v54, %s1505_s26 }
0x1920   :  { %v1117_v55 = vpop.permute.xlu1 %1116 }
0x1921   :  { %1361 = vmatmul.msk.f32.vlgmr.msrb.gmra.mxu2 %vm88_vm1, %v1117_v55 }
0x19a4   :  { %v1137_v56 = vpop.f32.mrf.mxu2 }
0x19a5   :  { %v1141_v57 = vrot.slane %v1137_v56, 4 }
0x19a7   :  { %v1143_v58 = vadd.f32 %v1141_v57, %v1835_v62 }
0x19a9   :  { %1488 = vtanh.f32 %v1143_v58  ;;  %v1362_v60 = vmul.f32 -1.442695, %v1143_v58 }
0x19ab   :  { %1490 = vpow2.f32 %v1362_v60 }
0x19af   :  { %v1489_v59 = vpop.eup %1488 }
0x19b0   :  { %1169 = vrot.lane.b32.xlu2 %v1489_v59, %s1504_s23 }
0x19b1   :  { %v1491_v61 = vpop.eup %1490 }
0x19b2   :  { %v1147_v63 = vadd.f32 1.0, %v1491_v61 }
0x19b4   :  { %1492 = vrcp.f32 %v1147_v63  ;;  %v1159_v4 = vand.u32 2147483648, %v1147_v63  ;;  %vm1153_vm11 = vweird.f32 %v1147_v63  ;;  %v1157_v5 = vand.u32 2147483647, %v1147_v63 }
0x19b6   :  { %v1160_v7 = vor.u32 1.1754944e-38, %v1159_v4  ;;  %vm1158_vm13 = vcmp.eq.f32.partialorder %v1157_v5, 8.507059e+37 }
0x19ba   :  { %v1493_v0 = vpop.eup %1492 }
0x19bb   :  { %v1149_v10 = vmul.f32 %v1493_v0, %v1147_v63  ;;  %vm1154_vm10 = vweird.f32 %v1493_v0 }
0x19bc   :  { %vm1155_vm12 = vmor %vm1153_vm11, %vm1154_vm10 }
0x19bd   :  { %v1150_v1 = vsub.f32 1.0, %v1149_v10 }
0x19bf   :  { %v1151_v2 = vmul.f32 %v1493_v0, %v1150_v1 }
0x19c1   :  { %v1152_v3 = vadd.f32 %v1493_v0, %v1151_v2 }
0x19c3   :  { %v1156_v6 = vsel %vm1155_vm12, %v1493_v0, %v1152_v3 }
0x19c4   :  { %v1161_v41 = vsel %vm1158_vm13, %v1160_v7, %v1156_v6 }
0x19c5   :  { %v1167_v13 = vmul.f32 %v1165_v11, %v1161_v41 }
0x1a0a   :  { %v1170_v8 = vpop.permute.xlu2 %1169 }
0x1a0b   :  { %v1172_v9 = vmul.f32 %v1170_v8, %v1161_v41 }
0x1a0d   :  { %1174 = vrot.lane.b32.xlu0 %v1172_v9, %s1505_s26 }
0x1a7f   :  { %v1175_v14 = vpop.permute.xlu0 %1174 }
0x1a80   :  { %v1177_v15 = vadd.f32 %v1175_v14, %v1167_v13 }
0x1a82   :  { %1494 = vtanh.f32 %v1177_v15  ;;  %v1235_v49 = vrot.slane %v1177_v15, 6 }
0x1a88   :  { %v1495_v16 = vpop.eup %1494 }
0x1a89   :  { %1180 = vrot.lane.b32.xlu1 %v1495_v16, %s1504_s23 }
0x1afb   :  { %v1181_v17 = vpop.permute.xlu1 %1180 }
0x1afc   :  { %v1183_v18 = vmul.f32 %v1181_v17, %v1161_v41 }
0x1afe   :  { %v1185_v21 = vrot.slane %v1183_v18, 4  ;;  %v1859_v22 = vsel %vm652_vm15, %v1269_v20, %v1183_v18 }
0x1b00   :  { %1186 = vrot.lane.b32.xlu2 %v1185_v21, %s1505_s26 }
0x1b5a   :  { %v1187_v28 = vpop.permute.xlu2 %1186 }
0x1b5b   :  { %1363 = vmatmul.msk.f32.vlgmr.msra.gmra.mxu3 %vm88_vm1, %v1187_v28 }
0x1bde   :  { %v1207_v26 = vpop.f32.mrf.mxu3 }
0x1bdf   :  { %v1211_v19 = vrot.slane %v1207_v26, 2 }
0x1be1   :  { %v1213_v29 = vadd.f32 %v1211_v19, %v1835_v62  ;;  %v1274_v62 = vld [vmem:[%s1926_s9 + $0x10] sm:$0xff] }
0x1be2   :  { %1303 = vmatpush.msra.mxu0 %v1274_v62 }
0x1be3   :  { %1496 = vtanh.f32 %v1213_v29  ;;  %v1364_v23 = vmul.f32 -1.442695, %v1213_v29 }
0x1be5   :  { %1498 = vpow2.f32 %v1364_v23 }
0x1be9   :  { %v1497_v27 = vpop.eup %1496 }
0x1bea   :  { %1239 = vrot.lane.b32.xlu0 %v1497_v27, %s1504_s23 }
0x1beb   :  { %v1499_v36 = vpop.eup %1498 }
0x1bec   :  { %v1217_v39 = vadd.f32 1.0, %v1499_v36 }
0x1bee   :  { %1500 = vrcp.f32 %v1217_v39  ;;  %v1229_v38 = vand.u32 2147483648, %v1217_v39  ;;  %vm1223_vm15 = vweird.f32 %v1217_v39  ;;  %v1227_v44 = vand.u32 2147483647, %v1217_v39 }
0x1bf0   :  { %v1230_v46 = vor.u32 1.1754944e-38, %v1229_v38  ;;  %vm1228_vm2 = vcmp.eq.f32.partialorder %v1227_v44, 8.507059e+37 }
0x1bf2   :  { %1282 = vrot.lane.b32.xlu0 %v1830_v37, %s1505_s26  ;;  %v1273_v37 = vld [vmem:[%s1926_s9 + $0x8] sm:$0xff] }
0x1bf3   :  { %1304 = vmatpush.msra.mxu0 %v1273_v37 }
0x1bf4   :  { %v1501_v42 = vpop.eup %1500 }
0x1bf5   :  { %v1219_v31 = vmul.f32 %v1501_v42, %v1217_v39  ;;  %vm1224_vm14 = vweird.f32 %v1501_v42 }
0x1bf6   :  { %vm1225_vm0 = vmor %vm1223_vm15, %vm1224_vm14 }
0x1bf7   :  { %v1220_v30 = vsub.f32 1.0, %v1219_v31 }
0x1bf9   :  { %v1221_v43 = vmul.f32 %v1501_v42, %v1220_v30 }
0x1bfa   :  { %646 = vrot.lane.b32.xlu0 %v1813_v24, %s1506_s6  ;;  %v1272_v24 = vld [vmem:[%s1926_s9] sm:$0xff] }
0x1bfb   :  { %1305 = vmatpush.msra.mxu0 %v1272_v24  ;;  %v1222_v25 = vadd.f32 %v1501_v42, %v1221_v43 }
0x1bfd   :  { %v1226_v45 = vsel %vm1225_vm0, %v1501_v42, %v1222_v25 }
0x1bfe   :  { %v1231_v32 = vsel %vm1228_vm2, %v1230_v46, %v1226_v45 }
0x1bff   :  { %v1237_v35 = vmul.f32 %v1235_v49, %v1231_v32 }
0x1c5c   :  { %v1240_v47 = vpop.permute.xlu0 %1239 }
0x1c5d   :  { %v1242_v33 = vmul.f32 %v1240_v47, %v1231_v32 }
0x1c5f   :  { %1244 = vrot.lane.b32.xlu1 %v1242_v33, %s1505_s26 }
0x1c64   :  { %v1283_v34 = vpop.permute.xlu0 %1282 }
0x1c65   :  { %1367 = vmatmul.msk.f32.vlgmr.msra.gmra.mxu0 %vm88_vm1, %v1283_v34 }
0x1c6c   :  { %v647_v48 = vpop.permute.xlu0 %646 }
0x1c6d   :  { %649 = vst.msk [vmem:[%s1928_s13 - $0x6] sm:$0xc0] %vm643_vm3, %v647_v48 }
0x1cd1   :  { %v1245_v50 = vpop.permute.xlu1 %1244 }
0x1cd2   :  { %v1247_v51 = vadd.f32 %v1245_v50, %v1237_v35 }
0x1cd4   :  { %1502 = vtanh.f32 %v1247_v51 }
0x1cda   :  { %v1503_v52 = vpop.eup %1502 }
0x1cdb   :  { %1250 = vrot.lane.b32.xlu2 %v1503_v52, %s1504_s23 }
0x1ce2   :  { %v1307_v54 = vpop.f32.mrf.mxu0 }
0x1ce3   :  { %v1308_v55 = vadd.f32 %v1375_v53, %v1307_v54  ;;  %640 = vrot.lane.b32.xlu2 %v1819_v12, %s1505_s26 }
0x1ce5   :  { %1313 = vst [vmem:[%s1929_s11] sm:$0xff] %v1308_v55 }
0x1ceb   :  { %1261 = vrot.lane.b32.xlu2 %v1247_v51, %s1506_s6 }
0x1d35   :  { %v1251_v56 = vpop.permute.xlu2 %1250 }
0x1d36   :  { %v1253_v57 = vmul.f32 %v1251_v56, %v1231_v32 }
0x1d38   :  { %v1271_v58 = vsel %vm654_vm5, %v1859_v22, %v1253_v57 }
0x1d39   :  { %1284 = vrot.lane.b32.xlu1 %v1271_v58, %s1505_s26 }
0x1d3d   :  { %v641_v59 = vpop.permute.xlu2 %640 }
0x1d3e   :  { %644 = vst.msk [vmem:[%s1930_s12 - $0x6] sm:$0xc0] %vm643_vm3, %v641_v59 }
0x1d41   :  { %1255 = vrot.lane.b32.xlu1 %v1253_v57, %s1505_s26 }
0x1d45   :  { %v1262_v12 = vpop.permute.xlu2 %1261 }
0x1d46   :  { %1366 = vst.msk [vmem:[%s1928_s13 - $0x4] sm:$0xc0] %vm643_vm3, %v1262_v12 }
0x1dab   :  { %v1285_v60 = vpop.permute.xlu1 %1284 }
0x1dac   :  { %1368 = vmatmul.msk.f32.gmra.mxu0 %vm88_vm1, %v1285_v60 }
0x1db3   :  { %v1256_v61 = vpop.permute.xlu1 %1255 }
0x1db4   :  { %1365 = vst.msk [vmem:[%s1930_s12 - $0x4] sm:$0xc0] %vm643_vm3, %v1256_v61 }
0x1e29   :  { %v1310_v63 = vpop.f32.mrf.mxu0 }
0x1e2a   :  { %v1311_v0 = vadd.f32 %v1375_v53, %v1310_v63 }
0x1e2c   :  { %1314 = vst [vmem:[%s1929_s11 + $0x8] sm:$0xff] %v1311_v0 }

</bundles_post_ra>
